<compile_context>
chip_gen: v5e
topology: v5e:2x2
jax: 0.10.0
libtpu: 0.0.40
codegen_flags: <defaults>
</compile_context>

<pallas_src>
import math
import jax
import jax.numpy as jnp
from jax import lax
from jax.experimental import pallas as pl
from jax.experimental.pallas import tpu as pltpu

# --- model config (small, deterministic synthetic init) --------------------
VOCAB      = 100
EMBED_DIM  = 32
NUM_HEADS  = 4
HEAD_DIM   = EMBED_DIM // NUM_HEADS
FF_DIM     = 64
NUM_BLOCKS = 2
LN_EPS     = 1e-5

# Set to jnp.bfloat16 on v6e/v7x for MXU headroom at larger E/S/F (accumulation
# stays f32).  Default f32 keeps parity with the f32 PyTorch reference math.
MATMUL_DTYPE = jnp.float32


def _bmm(a, b, ca, cb):
    """Batched matmul over leading dim 0 with f32 accumulation."""
    return lax.dot_general(
        a.astype(MATMUL_DTYPE), b.astype(MATMUL_DTYPE),
        dimension_numbers=(((ca,), (cb,)), ((0,), (0,))),
        preferred_element_type=jnp.float32)


# --- Pallas kernel: the full encoder stack in one launch --------------------
def encoder_stack_kernel(x_ref, mask_ref,
                         wqkv_ref, wo_ref, bo_ref,
                         ln1g_ref, ln1b_ref,
                         w1_ref, b1_ref, w2_ref, b2_ref,
                         ln2g_ref, ln2b_ref,
                         out_ref, attn_ref):
    H, DH = NUM_HEADS, HEAD_DIM
    x = x_ref[...]                      # (BS, E) flattened batch*seq
    mask = mask_ref[...]                # (BS, BS) additive (block-diag + key padding)
    BS, E = x.shape

    for blk in range(NUM_BLOCKS):       # static unroll: all blocks fused, one launch
        # ---- multi-head self-attention, all heads batched on a leading dim ----
        x_b = jnp.broadcast_to(x, (H, BS, E))               # (H, BS, E)
        qkv = _bmm(x_b, wqkv_ref[blk], 2, 1)                 # (H, BS, 3*DH); scale folded in Wq
        q = qkv[..., :DH]
        k = qkv[..., DH:2 * DH]
        v = qkv[..., 2 * DH:]

        s = _bmm(q, k, 2, 2) + mask[None, :, :]              # (H, BS, BS)
        s = s - jnp.max(s, axis=-1, keepdims=True)
        e = jnp.exp(s)
        p = e * pl.reciprocal(jnp.sum(e, axis=-1, keepdims=True), approx=True)

        if blk == NUM_BLOCKS - 1:       # PyTorch loop returns only the last block's attn
            attn_ref[...] = p           # single whole-slab store (attn_dropout = identity)

        ctx = _bmm(p, v, 2, 1)                               # (H, BS, DH)
        proj = _bmm(ctx, wo_ref[blk], 2, 1)                  # (H, BS, E)
        mha = proj[0]                                        # reduce heads: cheap VPU adds
        for h in range(1, H):
            mha = mha + proj[h]
        mha = mha + bo_ref[blk]                              # (BS, E)

        # ---- residual + LayerNorm1 (dropout1 = identity in eval) ----
        h1 = mha + x
        mu = jnp.mean(h1, axis=-1, keepdims=True)
        var = jnp.mean((h1 - mu) ** 2, axis=-1, keepdims=True)
        h1 = (h1 - mu) * lax.rsqrt(var + LN_EPS) * ln1g_ref[blk] + ln1b_ref[blk]

        # ---- feed-forward: Linear -> ReLU -> (dropout = id) -> Linear ----
        f = jnp.dot(h1.astype(MATMUL_DTYPE), w1_ref[blk].astype(MATMUL_DTYPE),
                    preferred_element_type=jnp.float32) + b1_ref[blk]
        f = jnp.maximum(f, 0.0)
        f = jnp.dot(f.astype(MATMUL_DTYPE), w2_ref[blk].astype(MATMUL_DTYPE),
                    preferred_element_type=jnp.float32) + b2_ref[blk]

        # ---- residual + LayerNorm2 (dropout2 = identity) ----
        h2 = f + h1
        mu2 = jnp.mean(h2, axis=-1, keepdims=True)
        var2 = jnp.mean((h2 - mu2) ** 2, axis=-1, keepdims=True)
        x = (h2 - mu2) * lax.rsqrt(var2 + LN_EPS) * ln2g_ref[blk] + ln2b_ref[blk]

    out_ref[...] = x


def encoder_stack_call(x2d, mask2d, p):
    """x2d: (B*S, E) f32, mask2d: (B*S, B*S) additive f32, p: stacked block params."""
    BS, E = x2d.shape
    H = NUM_HEADS
    out_shape = (
        jax.ShapeDtypeStruct((BS, E), jnp.float32),
        jax.ShapeDtypeStruct((H, BS, BS), jnp.float32),
    )
    # Single invocation, no grid: activations + every block's weights are a few
    # tens of KiB -- far below VMEM on v5e/v6e/v7x -- so everything stays resident.
    vmem = lambda: pl.BlockSpec(memory_space=pltpu.MemorySpace.VMEM)
    return pl.pallas_call(
        encoder_stack_kernel,
        out_shape=out_shape,
        in_specs=[vmem() for _ in range(13)],
        out_specs=(vmem(), vmem()),
    )(x2d, mask2d,
      p["wqkv"], p["wo"], p["bo"],
      p["ln1g"], p["ln1b"],
      p["w1"], p["b1"], p["w2"], p["b2"],
      p["ln2g"], p["ln2b"])


# --- glue: embedding (plain JAX) + wrapper ----------------------------------
# TODO(synk): TextEmbedding internals not provided; assuming token embedding
# scaled by sqrt(E) + sinusoidal positional encoding, dropout = identity.
def text_embedding(input_ids, emb_table):
    B, S = input_ids.shape
    E = emb_table.shape[1]
    tok = jnp.take(emb_table, input_ids, axis=0) * math.sqrt(E)
    pos = jnp.arange(S, dtype=jnp.float32)[:, None]
    i = jnp.arange(E, dtype=jnp.float32)[None, :]
    angle = pos / jnp.power(10000.0, (2.0 * jnp.floor(i / 2.0)) / E)
    pe = jnp.where((jnp.arange(E) % 2) == 0, jnp.sin(angle), jnp.cos(angle))
    return (tok + pe[None]).astype(jnp.float32)


def make_params(key):
    E, F, H, dh = EMBED_DIM, FF_DIM, NUM_HEADS, HEAD_DIM
    keys = jax.random.split(key, 1 + NUM_BLOCKS)
    emb_table = jax.random.normal(keys[0], (VOCAB, E), jnp.float32) * 0.02

    def xavier(k, shape):
        return (jax.random.uniform(k, shape, jnp.float32, -1.0, 1.0)
                * math.sqrt(6.0 / (shape[0] + shape[1])))

    def per_head_cols(w):              # (E, E) -> (H, E, dh): columns grouped by head
        return jnp.transpose(w.reshape(E, H, dh), (1, 0, 2))

    scale = 1.0 / math.sqrt(dh)        # folded into Wq once (not per call)
    blocks = []
    for b in range(NUM_BLOCKS):
        ks = jax.random.split(keys[1 + b], 8)
        wq = xavier(ks[0], (E, E)); wk = xavier(ks[1], (E, E))
        wv = xavier(ks[2], (E, E)); wo = xavier(ks[3], (E, E))
        blocks.append(dict(
            # fused per-head QKV weight (qkv_bias=False), softmax scale pre-folded
            wqkv=jnp.concatenate([per_head_cols(wq * scale),
                                  per_head_cols(wk),
                                  per_head_cols(wv)], axis=-1),      # (H, E, 3*dh)
            wo=wo.reshape(H, dh, E),                                  # rows grouped by head
            bo=jnp.zeros((1, E), jnp.float32),
            ln1g=jnp.ones((1, E), jnp.float32), ln1b=jnp.zeros((1, E), jnp.float32),
            w1=xavier(ks[4], (E, F)), b1=jnp.zeros((1, F), jnp.float32),
            w2=xavier(ks[5], (F, E)), b2=jnp.zeros((1, E), jnp.float32),
            ln2g=jnp.ones((1, E), jnp.float32), ln2b=jnp.zeros((1, E), jnp.float32),
        ))
    stacked = {k: jnp.stack([blk[k] for blk in blocks], axis=0) for k in blocks[0]}
    return emb_table, stacked


def transformer_encoder(input_ids, src_padding_mask, emb_table, params):
    B, S = input_ids.shape
    E, H = EMBED_DIM, NUM_HEADS
    x2d = text_embedding(input_ids, emb_table).reshape(B * S, E)

    # Combined additive mask: forbid cross-batch attention (batch is flattened
    # into the matmul M dimension) and mask padded keys.  exp(-1e9) == 0 in f32,
    # so per-example attention is reproduced exactly.  Padded *query* rows still
    # produce outputs, matching the reference PyTorch behavior.
    bid = jnp.arange(B * S, dtype=jnp.int32) // S
    invalid = (bid[:, None] != bid[None, :]) | src_padding_mask.reshape(-1)[None, :]
    mask2d = jnp.where(invalid, -1e9, 0.0).astype(jnp.float32)

    out2d, attn_full = encoder_stack_call(x2d, mask2d, params)
    out = out2d.reshape(B, S, E)
    # (H, B*S, B*S) -> last block's (B, H, S, S): per-batch diagonal blocks.
    attn = jnp.stack([attn_full[:, b * S:(b + 1) * S, b * S:(b + 1) * S]
                      for b in range(B)], axis=0)
    return out, attn


if __name__ == "__main__":
    B, S = 2, 8
    key = jax.random.PRNGKey(0)
    k_ids, k_params = jax.random.split(key)
    input_ids = jax.random.randint(k_ids, (B, S), 0, VOCAB, dtype=jnp.int32)
    # mark the last 2 positions of batch element 1 as padding
    src_padding_mask = jnp.zeros((B, S), dtype=bool).at[1, -2:].set(True)

    emb_table, params = make_params(k_params)
    fwd = jax.jit(transformer_encoder)
    out, attn = fwd(input_ids, src_padding_mask, emb_table, params)
    jax.block_until_ready((out, attn))
    assert out.shape == (B, S, EMBED_DIM)
    assert attn.shape == (B, NUM_HEADS, S, S)
    print("KERNEL_OK")
</pallas_src>

<mosaic_0001>
module attributes {stable_mosaic.version = 11 : i64} {
  func.func @encoder_stack_kernel(%arg0: memref<16x32xf32, #tpu.memory_space<vmem>>, %arg1: memref<16x16xf32, #tpu.memory_space<vmem>>, %arg2: memref<2x4x32x24xf32, #tpu.memory_space<vmem>>, %arg3: memref<2x4x8x32xf32, #tpu.memory_space<vmem>>, %arg4: memref<2x1x32xf32, #tpu.memory_space<vmem>>, %arg5: memref<2x1x32xf32, #tpu.memory_space<vmem>>, %arg6: memref<2x1x32xf32, #tpu.memory_space<vmem>>, %arg7: memref<2x32x64xf32, #tpu.memory_space<vmem>>, %arg8: memref<2x1x64xf32, #tpu.memory_space<vmem>>, %arg9: memref<2x64x32xf32, #tpu.memory_space<vmem>>, %arg10: memref<2x1x32xf32, #tpu.memory_space<vmem>>, %arg11: memref<2x1x32xf32, #tpu.memory_space<vmem>>, %arg12: memref<2x1x32xf32, #tpu.memory_space<vmem>>, %arg13: memref<16x32xf32, #tpu.memory_space<vmem>>, %arg14: memref<4x16x16xf32, #tpu.memory_space<vmem>>) attributes {dimension_semantics = [], scalar_prefetch = 0 : i64, scratch_operands = 0 : i64, tpu.core_type = #tpu.core_type<tc>} {
    %c0 = arith.constant 0 : index
    %c0_0 = arith.constant 0 : index
    %0 = vector.load %arg0[%c0, %c0_0] : memref<16x32xf32, #tpu.memory_space<vmem>>, vector<16x32xf32>
    %c0_1 = arith.constant 0 : index
    %c0_2 = arith.constant 0 : index
    %1 = vector.load %arg1[%c0_1, %c0_2] : memref<16x16xf32, #tpu.memory_space<vmem>>, vector<16x16xf32>
    %2 = vector.shape_cast %0 : vector<16x32xf32> to vector<1x16x32xf32>
    %3 = vector.broadcast %2 : vector<1x16x32xf32> to vector<4x16x32xf32>
    %c0_3 = arith.constant 0 : index
    %c0_4 = arith.constant 0 : index
    %c0_5 = arith.constant 0 : index
    %c0_6 = arith.constant 0 : index
    %4 = vector.load %arg2[%c0_3, %c0_4, %c0_5, %c0_6] : memref<2x4x32x24xf32, #tpu.memory_space<vmem>>, vector<1x4x32x24xf32>
    %5 = vector.shape_cast %4 : vector<1x4x32x24xf32> to vector<4x32x24xf32>
    %cst = arith.constant dense<0.000000e+00> : vector<4x16x24xf32>
    %6 = tpu.matmul %3, %5, %cst {dimension_numbers = #tpu.dot_dimension_numbers<[2], [1], [1], [2], [0, 0, 0, 1, 1, 2], [0], [0]>} : vector<4x16x32xf32>, vector<4x32x24xf32>, vector<4x16x24xf32> -> vector<4x16x24xf32>
    %7 = vector.extract_strided_slice %6 {offsets = [0, 0, 0], sizes = [4, 16, 8], strides = [1, 1, 1]} : vector<4x16x24xf32> to vector<4x16x8xf32>
    %8 = vector.extract_strided_slice %6 {offsets = [0, 0, 8], sizes = [4, 16, 8], strides = [1, 1, 1]} : vector<4x16x24xf32> to vector<4x16x8xf32>
    %9 = vector.extract_strided_slice %6 {offsets = [0, 0, 16], sizes = [4, 16, 8], strides = [1, 1, 1]} : vector<4x16x24xf32> to vector<4x16x8xf32>
    %cst_7 = arith.constant dense<0.000000e+00> : vector<4x16x16xf32>
    %10 = tpu.matmul %7, %8, %cst_7 {dimension_numbers = #tpu.dot_dimension_numbers<[2], [2], [1], [1], [0, 0, 0, 1, 1, 1], [0], [0]>} : vector<4x16x8xf32>, vector<4x16x8xf32>, vector<4x16x16xf32> -> vector<4x16x16xf32>
    %11 = vector.shape_cast %1 : vector<16x16xf32> to vector<1x16x16xf32>
    %12 = vector.broadcast %11 : vector<1x16x16xf32> to vector<4x16x16xf32>
    %13 = arith.addf %10, %12 : vector<4x16x16xf32>
    %cst_8 = arith.constant dense<0xFF800000> : vector<4x16xf32>
    %14 = vector.multi_reduction <maximumf>, %13, %cst_8 [2] : vector<4x16x16xf32> to vector<4x16xf32>
    %15 = vector.shape_cast %14 : vector<4x16xf32> to vector<4x16x1xf32>
    %16 = vector.broadcast %15 : vector<4x16x1xf32> to vector<4x16x16xf32>
    %17 = arith.subf %13, %16 : vector<4x16x16xf32>
    %18 = math.exp %17 : vector<4x16x16xf32>
    %cst_9 = arith.constant dense<0.000000e+00> : vector<4x16xf32>
    %19 = vector.multi_reduction <add>, %18, %cst_9 [2] : vector<4x16x16xf32> to vector<4x16xf32>
    %20 = vector.shape_cast %19 : vector<4x16xf32> to vector<4x16x1xf32>
    %21 = tpu.reciprocal %20 {approx = true} : vector<4x16x1xf32> -> vector<4x16x1xf32>
    %22 = vector.broadcast %21 : vector<4x16x1xf32> to vector<4x16x16xf32>
    %23 = arith.mulf %18, %22 : vector<4x16x16xf32>
    %cst_10 = arith.constant dense<0.000000e+00> : vector<4x16x8xf32>
    %24 = tpu.matmul %23, %9, %cst_10 {dimension_numbers = #tpu.dot_dimension_numbers<[2], [1], [1], [2], [0, 0, 0, 1, 1, 2], [0], [0]>} : vector<4x16x16xf32>, vector<4x16x8xf32>, vector<4x16x8xf32> -> vector<4x16x8xf32>
    %c0_11 = arith.constant 0 : index
    %c0_12 = arith.constant 0 : index
    %c0_13 = arith.constant 0 : index
    %c0_14 = arith.constant 0 : index
    %25 = vector.load %arg3[%c0_11, %c0_12, %c0_13, %c0_14] : memref<2x4x8x32xf32, #tpu.memory_space<vmem>>, vector<1x4x8x32xf32>
    %26 = vector.shape_cast %25 : vector<1x4x8x32xf32> to vector<4x8x32xf32>
    %cst_15 = arith.constant dense<0.000000e+00> : vector<4x16x32xf32>
    %27 = tpu.matmul %24, %26, %cst_15 {dimension_numbers = #tpu.dot_dimension_numbers<[2], [1], [1], [2], [0, 0, 0, 1, 1, 2], [0], [0]>} : vector<4x16x8xf32>, vector<4x8x32xf32>, vector<4x16x32xf32> -> vector<4x16x32xf32>
    %28 = vector.extract_strided_slice %27 {offsets = [0, 0, 0], sizes = [1, 16, 32], strides = [1, 1, 1]} : vector<4x16x32xf32> to vector<1x16x32xf32>
    %29 = vector.shape_cast %28 : vector<1x16x32xf32> to vector<16x32xf32>
    %30 = vector.extract_strided_slice %27 {offsets = [1, 0, 0], sizes = [1, 16, 32], strides = [1, 1, 1]} : vector<4x16x32xf32> to vector<1x16x32xf32>
    %31 = vector.shape_cast %30 : vector<1x16x32xf32> to vector<16x32xf32>
    %32 = arith.addf %29, %31 : vector<16x32xf32>
    %33 = vector.extract_strided_slice %27 {offsets = [2, 0, 0], sizes = [1, 16, 32], strides = [1, 1, 1]} : vector<4x16x32xf32> to vector<1x16x32xf32>
    %34 = vector.shape_cast %33 : vector<1x16x32xf32> to vector<16x32xf32>
    %35 = arith.addf %32, %34 : vector<16x32xf32>
    %36 = vector.extract_strided_slice %27 {offsets = [3, 0, 0], sizes = [1, 16, 32], strides = [1, 1, 1]} : vector<4x16x32xf32> to vector<1x16x32xf32>
    %37 = vector.shape_cast %36 : vector<1x16x32xf32> to vector<16x32xf32>
    %38 = arith.addf %35, %37 : vector<16x32xf32>
    %c0_16 = arith.constant 0 : index
    %c0_17 = arith.constant 0 : index
    %c0_18 = arith.constant 0 : index
    %39 = vector.load %arg4[%c0_16, %c0_17, %c0_18] : memref<2x1x32xf32, #tpu.memory_space<vmem>>, vector<1x1x32xf32>
    %40 = vector.shape_cast %39 : vector<1x1x32xf32> to vector<1x32xf32>
    %41 = vector.broadcast %40 : vector<1x32xf32> to vector<16x32xf32>
    %42 = arith.addf %38, %41 : vector<16x32xf32>
    %43 = arith.addf %42, %0 : vector<16x32xf32>
    %cst_19 = arith.constant dense<0.000000e+00> : vector<16xf32>
    %44 = vector.multi_reduction <add>, %43, %cst_19 [1] : vector<16x32xf32> to vector<16xf32>
    %45 = vector.shape_cast %44 : vector<16xf32> to vector<16x1xf32>
    %cst_20 = arith.constant 3.200000e+01 : f32
    %46 = vector.broadcast %cst_20 : f32 to vector<16x1xf32>
    %47 = arith.divf %45, %46 : vector<16x1xf32>
    %48 = vector.broadcast %47 : vector<16x1xf32> to vector<16x32xf32>
    %49 = arith.subf %43, %48 : vector<16x32xf32>
    %50 = arith.mulf %49, %49 : vector<16x32xf32>
    %cst_21 = arith.constant dense<0.000000e+00> : vector<16xf32>
    %51 = vector.multi_reduction <add>, %50, %cst_21 [1] : vector<16x32xf32> to vector<16xf32>
    %52 = vector.shape_cast %51 : vector<16xf32> to vector<16x1xf32>
    %cst_22 = arith.constant 3.200000e+01 : f32
    %53 = vector.broadcast %cst_22 : f32 to vector<16x1xf32>
    %54 = arith.divf %52, %53 : vector<16x1xf32>
    %55 = vector.broadcast %47 : vector<16x1xf32> to vector<16x32xf32>
    %56 = arith.subf %43, %55 : vector<16x32xf32>
    %cst_23 = arith.constant 9.99999974E-6 : f32
    %57 = vector.broadcast %cst_23 : f32 to vector<16x1xf32>
    %58 = arith.addf %54, %57 : vector<16x1xf32>
    %59 = math.rsqrt %58 : vector<16x1xf32>
    %60 = vector.broadcast %59 : vector<16x1xf32> to vector<16x32xf32>
    %61 = arith.mulf %56, %60 : vector<16x32xf32>
    %c0_24 = arith.constant 0 : index
    %c0_25 = arith.constant 0 : index
    %c0_26 = arith.constant 0 : index
    %62 = vector.load %arg5[%c0_24, %c0_25, %c0_26] : memref<2x1x32xf32, #tpu.memory_space<vmem>>, vector<1x1x32xf32>
    %63 = vector.shape_cast %62 : vector<1x1x32xf32> to vector<1x32xf32>
    %64 = vector.broadcast %63 : vector<1x32xf32> to vector<16x32xf32>
    %65 = arith.mulf %61, %64 : vector<16x32xf32>
    %c0_27 = arith.constant 0 : index
    %c0_28 = arith.constant 0 : index
    %c0_29 = arith.constant 0 : index
    %66 = vector.load %arg6[%c0_27, %c0_28, %c0_29] : memref<2x1x32xf32, #tpu.memory_space<vmem>>, vector<1x1x32xf32>
    %67 = vector.shape_cast %66 : vector<1x1x32xf32> to vector<1x32xf32>
    %68 = vector.broadcast %67 : vector<1x32xf32> to vector<16x32xf32>
    %69 = arith.addf %65, %68 : vector<16x32xf32>
    %c0_30 = arith.constant 0 : index
    %c0_31 = arith.constant 0 : index
    %c0_32 = arith.constant 0 : index
    %70 = vector.load %arg7[%c0_30, %c0_31, %c0_32] : memref<2x32x64xf32, #tpu.memory_space<vmem>>, vector<1x32x64xf32>
    %71 = vector.shape_cast %70 : vector<1x32x64xf32> to vector<32x64xf32>
    %cst_33 = arith.constant dense<0.000000e+00> : vector<16x64xf32>
    %72 = tpu.matmul %69, %71, %cst_33 {dimension_numbers = #tpu.dot_dimension_numbers<[1], [0], [0], [1], [0, 0, 1, 1], [], []>} : vector<16x32xf32>, vector<32x64xf32>, vector<16x64xf32> -> vector<16x64xf32>
    %c0_34 = arith.constant 0 : index
    %c0_35 = arith.constant 0 : index
    %c0_36 = arith.constant 0 : index
    %73 = vector.load %arg8[%c0_34, %c0_35, %c0_36] : memref<2x1x64xf32, #tpu.memory_space<vmem>>, vector<1x1x64xf32>
    %74 = vector.shape_cast %73 : vector<1x1x64xf32> to vector<1x64xf32>
    %75 = vector.broadcast %74 : vector<1x64xf32> to vector<16x64xf32>
    %76 = arith.addf %72, %75 : vector<16x64xf32>
    %cst_37 = arith.constant 0.000000e+00 : f32
    %77 = vector.broadcast %cst_37 : f32 to vector<16x64xf32>
    %78 = arith.maximumf %76, %77 : vector<16x64xf32>
    %c0_38 = arith.constant 0 : index
    %c0_39 = arith.constant 0 : index
    %c0_40 = arith.constant 0 : index
    %79 = vector.load %arg9[%c0_38, %c0_39, %c0_40] : memref<2x64x32xf32, #tpu.memory_space<vmem>>, vector<1x64x32xf32>
    %80 = vector.shape_cast %79 : vector<1x64x32xf32> to vector<64x32xf32>
    %cst_41 = arith.constant dense<0.000000e+00> : vector<16x32xf32>
    %81 = tpu.matmul %78, %80, %cst_41 {dimension_numbers = #tpu.dot_dimension_numbers<[1], [0], [0], [1], [0, 0, 1, 1], [], []>} : vector<16x64xf32>, vector<64x32xf32>, vector<16x32xf32> -> vector<16x32xf32>
    %c0_42 = arith.constant 0 : index
    %c0_43 = arith.constant 0 : index
    %c0_44 = arith.constant 0 : index
    %82 = vector.load %arg10[%c0_42, %c0_43, %c0_44] : memref<2x1x32xf32, #tpu.memory_space<vmem>>, vector<1x1x32xf32>
    %83 = vector.shape_cast %82 : vector<1x1x32xf32> to vector<1x32xf32>
    %84 = vector.broadcast %83 : vector<1x32xf32> to vector<16x32xf32>
    %85 = arith.addf %81, %84 : vector<16x32xf32>
    %86 = arith.addf %85, %69 : vector<16x32xf32>
    %cst_45 = arith.constant dense<0.000000e+00> : vector<16xf32>
    %87 = vector.multi_reduction <add>, %86, %cst_45 [1] : vector<16x32xf32> to vector<16xf32>
    %88 = vector.shape_cast %87 : vector<16xf32> to vector<16x1xf32>
    %cst_46 = arith.constant 3.200000e+01 : f32
    %89 = vector.broadcast %cst_46 : f32 to vector<16x1xf32>
    %90 = arith.divf %88, %89 : vector<16x1xf32>
    %91 = vector.broadcast %90 : vector<16x1xf32> to vector<16x32xf32>
    %92 = arith.subf %86, %91 : vector<16x32xf32>
    %93 = arith.mulf %92, %92 : vector<16x32xf32>
    %cst_47 = arith.constant dense<0.000000e+00> : vector<16xf32>
    %94 = vector.multi_reduction <add>, %93, %cst_47 [1] : vector<16x32xf32> to vector<16xf32>
    %95 = vector.shape_cast %94 : vector<16xf32> to vector<16x1xf32>
    %cst_48 = arith.constant 3.200000e+01 : f32
    %96 = vector.broadcast %cst_48 : f32 to vector<16x1xf32>
    %97 = arith.divf %95, %96 : vector<16x1xf32>
    %98 = vector.broadcast %90 : vector<16x1xf32> to vector<16x32xf32>
    %99 = arith.subf %86, %98 : vector<16x32xf32>
    %cst_49 = arith.constant 9.99999974E-6 : f32
    %100 = vector.broadcast %cst_49 : f32 to vector<16x1xf32>
    %101 = arith.addf %97, %100 : vector<16x1xf32>
    %102 = math.rsqrt %101 : vector<16x1xf32>
    %103 = vector.broadcast %102 : vector<16x1xf32> to vector<16x32xf32>
    %104 = arith.mulf %99, %103 : vector<16x32xf32>
    %c0_50 = arith.constant 0 : index
    %c0_51 = arith.constant 0 : index
    %c0_52 = arith.constant 0 : index
    %105 = vector.load %arg11[%c0_50, %c0_51, %c0_52] : memref<2x1x32xf32, #tpu.memory_space<vmem>>, vector<1x1x32xf32>
    %106 = vector.shape_cast %105 : vector<1x1x32xf32> to vector<1x32xf32>
    %107 = vector.broadcast %106 : vector<1x32xf32> to vector<16x32xf32>
    %108 = arith.mulf %104, %107 : vector<16x32xf32>
    %c0_53 = arith.constant 0 : index
    %c0_54 = arith.constant 0 : index
    %c0_55 = arith.constant 0 : index
    %109 = vector.load %arg12[%c0_53, %c0_54, %c0_55] : memref<2x1x32xf32, #tpu.memory_space<vmem>>, vector<1x1x32xf32>
    %110 = vector.shape_cast %109 : vector<1x1x32xf32> to vector<1x32xf32>
    %111 = vector.broadcast %110 : vector<1x32xf32> to vector<16x32xf32>
    %112 = arith.addf %108, %111 : vector<16x32xf32>
    %113 = vector.shape_cast %112 : vector<16x32xf32> to vector<1x16x32xf32>
    %114 = vector.broadcast %113 : vector<1x16x32xf32> to vector<4x16x32xf32>
    %c1 = arith.constant 1 : index
    %c0_56 = arith.constant 0 : index
    %c0_57 = arith.constant 0 : index
    %c0_58 = arith.constant 0 : index
    %115 = vector.load %arg2[%c1, %c0_56, %c0_57, %c0_58] : memref<2x4x32x24xf32, #tpu.memory_space<vmem>>, vector<1x4x32x24xf32>
    %116 = vector.shape_cast %115 : vector<1x4x32x24xf32> to vector<4x32x24xf32>
    %cst_59 = arith.constant dense<0.000000e+00> : vector<4x16x24xf32>
    %117 = tpu.matmul %114, %116, %cst_59 {dimension_numbers = #tpu.dot_dimension_numbers<[2], [1], [1], [2], [0, 0, 0, 1, 1, 2], [0], [0]>} : vector<4x16x32xf32>, vector<4x32x24xf32>, vector<4x16x24xf32> -> vector<4x16x24xf32>
    %118 = vector.extract_strided_slice %117 {offsets = [0, 0, 0], sizes = [4, 16, 8], strides = [1, 1, 1]} : vector<4x16x24xf32> to vector<4x16x8xf32>
    %119 = vector.extract_strided_slice %117 {offsets = [0, 0, 8], sizes = [4, 16, 8], strides = [1, 1, 1]} : vector<4x16x24xf32> to vector<4x16x8xf32>
    %120 = vector.extract_strided_slice %117 {offsets = [0, 0, 16], sizes = [4, 16, 8], strides = [1, 1, 1]} : vector<4x16x24xf32> to vector<4x16x8xf32>
    %cst_60 = arith.constant dense<0.000000e+00> : vector<4x16x16xf32>
    %121 = tpu.matmul %118, %119, %cst_60 {dimension_numbers = #tpu.dot_dimension_numbers<[2], [2], [1], [1], [0, 0, 0, 1, 1, 1], [0], [0]>} : vector<4x16x8xf32>, vector<4x16x8xf32>, vector<4x16x16xf32> -> vector<4x16x16xf32>
    %122 = vector.shape_cast %1 : vector<16x16xf32> to vector<1x16x16xf32>
    %123 = vector.broadcast %122 : vector<1x16x16xf32> to vector<4x16x16xf32>
    %124 = arith.addf %121, %123 : vector<4x16x16xf32>
    %cst_61 = arith.constant dense<0xFF800000> : vector<4x16xf32>
    %125 = vector.multi_reduction <maximumf>, %124, %cst_61 [2] : vector<4x16x16xf32> to vector<4x16xf32>
    %126 = vector.shape_cast %125 : vector<4x16xf32> to vector<4x16x1xf32>
    %127 = vector.broadcast %126 : vector<4x16x1xf32> to vector<4x16x16xf32>
    %128 = arith.subf %124, %127 : vector<4x16x16xf32>
    %129 = math.exp %128 : vector<4x16x16xf32>
    %cst_62 = arith.constant dense<0.000000e+00> : vector<4x16xf32>
    %130 = vector.multi_reduction <add>, %129, %cst_62 [2] : vector<4x16x16xf32> to vector<4x16xf32>
    %131 = vector.shape_cast %130 : vector<4x16xf32> to vector<4x16x1xf32>
    %132 = tpu.reciprocal %131 {approx = true} : vector<4x16x1xf32> -> vector<4x16x1xf32>
    %133 = vector.broadcast %132 : vector<4x16x1xf32> to vector<4x16x16xf32>
    %134 = arith.mulf %129, %133 : vector<4x16x16xf32>
    %c0_63 = arith.constant 0 : index
    %c0_64 = arith.constant 0 : index
    %c0_65 = arith.constant 0 : index
    %135 = vector.load %arg14[%c0_63, %c0_64, %c0_65] : memref<4x16x16xf32, #tpu.memory_space<vmem>>, vector<4x16x16xf32>
    tpu.vector_store %arg14[%c0_63, %c0_64, %c0_65], %134 {strides = array<i32>} : memref<4x16x16xf32, #tpu.memory_space<vmem>>, vector<4x16x16xf32>,
    %cst_66 = arith.constant dense<0.000000e+00> : vector<4x16x8xf32>
    %136 = tpu.matmul %134, %120, %cst_66 {dimension_numbers = #tpu.dot_dimension_numbers<[2], [1], [1], [2], [0, 0, 0, 1, 1, 2], [0], [0]>} : vector<4x16x16xf32>, vector<4x16x8xf32>, vector<4x16x8xf32> -> vector<4x16x8xf32>
    %c1_67 = arith.constant 1 : index
    %c0_68 = arith.constant 0 : index
    %c0_69 = arith.constant 0 : index
    %c0_70 = arith.constant 0 : index
    %137 = vector.load %arg3[%c1_67, %c0_68, %c0_69, %c0_70] : memref<2x4x8x32xf32, #tpu.memory_space<vmem>>, vector<1x4x8x32xf32>
    %138 = vector.shape_cast %137 : vector<1x4x8x32xf32> to vector<4x8x32xf32>
    %cst_71 = arith.constant dense<0.000000e+00> : vector<4x16x32xf32>
    %139 = tpu.matmul %136, %138, %cst_71 {dimension_numbers = #tpu.dot_dimension_numbers<[2], [1], [1], [2], [0, 0, 0, 1, 1, 2], [0], [0]>} : vector<4x16x8xf32>, vector<4x8x32xf32>, vector<4x16x32xf32> -> vector<4x16x32xf32>
    %140 = vector.extract_strided_slice %139 {offsets = [0, 0, 0], sizes = [1, 16, 32], strides = [1, 1, 1]} : vector<4x16x32xf32> to vector<1x16x32xf32>
    %141 = vector.shape_cast %140 : vector<1x16x32xf32> to vector<16x32xf32>
    %142 = vector.extract_strided_slice %139 {offsets = [1, 0, 0], sizes = [1, 16, 32], strides = [1, 1, 1]} : vector<4x16x32xf32> to vector<1x16x32xf32>
    %143 = vector.shape_cast %142 : vector<1x16x32xf32> to vector<16x32xf32>
    %144 = arith.addf %141, %143 : vector<16x32xf32>
    %145 = vector.extract_strided_slice %139 {offsets = [2, 0, 0], sizes = [1, 16, 32], strides = [1, 1, 1]} : vector<4x16x32xf32> to vector<1x16x32xf32>
    %146 = vector.shape_cast %145 : vector<1x16x32xf32> to vector<16x32xf32>
    %147 = arith.addf %144, %146 : vector<16x32xf32>
    %148 = vector.extract_strided_slice %139 {offsets = [3, 0, 0], sizes = [1, 16, 32], strides = [1, 1, 1]} : vector<4x16x32xf32> to vector<1x16x32xf32>
    %149 = vector.shape_cast %148 : vector<1x16x32xf32> to vector<16x32xf32>
    %150 = arith.addf %147, %149 : vector<16x32xf32>
    %c1_72 = arith.constant 1 : index
    %c0_73 = arith.constant 0 : index
    %c0_74 = arith.constant 0 : index
    %151 = vector.load %arg4[%c1_72, %c0_73, %c0_74] : memref<2x1x32xf32, #tpu.memory_space<vmem>>, vector<1x1x32xf32>
    %152 = vector.shape_cast %151 : vector<1x1x32xf32> to vector<1x32xf32>
    %153 = vector.broadcast %152 : vector<1x32xf32> to vector<16x32xf32>
    %154 = arith.addf %150, %153 : vector<16x32xf32>
    %155 = arith.addf %154, %112 : vector<16x32xf32>
    %cst_75 = arith.constant dense<0.000000e+00> : vector<16xf32>
    %156 = vector.multi_reduction <add>, %155, %cst_75 [1] : vector<16x32xf32> to vector<16xf32>
    %157 = vector.shape_cast %156 : vector<16xf32> to vector<16x1xf32>
    %cst_76 = arith.constant 3.200000e+01 : f32
    %158 = vector.broadcast %cst_76 : f32 to vector<16x1xf32>
    %159 = arith.divf %157, %158 : vector<16x1xf32>
    %160 = vector.broadcast %159 : vector<16x1xf32> to vector<16x32xf32>
    %161 = arith.subf %155, %160 : vector<16x32xf32>
    %162 = arith.mulf %161, %161 : vector<16x32xf32>
    %cst_77 = arith.constant dense<0.000000e+00> : vector<16xf32>
    %163 = vector.multi_reduction <add>, %162, %cst_77 [1] : vector<16x32xf32> to vector<16xf32>
    %164 = vector.shape_cast %163 : vector<16xf32> to vector<16x1xf32>
    %cst_78 = arith.constant 3.200000e+01 : f32
    %165 = vector.broadcast %cst_78 : f32 to vector<16x1xf32>
    %166 = arith.divf %164, %165 : vector<16x1xf32>
    %167 = vector.broadcast %159 : vector<16x1xf32> to vector<16x32xf32>
    %168 = arith.subf %155, %167 : vector<16x32xf32>
    %cst_79 = arith.constant 9.99999974E-6 : f32
    %169 = vector.broadcast %cst_79 : f32 to vector<16x1xf32>
    %170 = arith.addf %166, %169 : vector<16x1xf32>
    %171 = math.rsqrt %170 : vector<16x1xf32>
    %172 = vector.broadcast %171 : vector<16x1xf32> to vector<16x32xf32>
    %173 = arith.mulf %168, %172 : vector<16x32xf32>
    %c1_80 = arith.constant 1 : index
    %c0_81 = arith.constant 0 : index
    %c0_82 = arith.constant 0 : index
    %174 = vector.load %arg5[%c1_80, %c0_81, %c0_82] : memref<2x1x32xf32, #tpu.memory_space<vmem>>, vector<1x1x32xf32>
    %175 = vector.shape_cast %174 : vector<1x1x32xf32> to vector<1x32xf32>
    %176 = vector.broadcast %175 : vector<1x32xf32> to vector<16x32xf32>
    %177 = arith.mulf %173, %176 : vector<16x32xf32>
    %c1_83 = arith.constant 1 : index
    %c0_84 = arith.constant 0 : index
    %c0_85 = arith.constant 0 : index
    %178 = vector.load %arg6[%c1_83, %c0_84, %c0_85] : memref<2x1x32xf32, #tpu.memory_space<vmem>>, vector<1x1x32xf32>
    %179 = vector.shape_cast %178 : vector<1x1x32xf32> to vector<1x32xf32>
    %180 = vector.broadcast %179 : vector<1x32xf32> to vector<16x32xf32>
    %181 = arith.addf %177, %180 : vector<16x32xf32>
    %c1_86 = arith.constant 1 : index
    %c0_87 = arith.constant 0 : index
    %c0_88 = arith.constant 0 : index
    %182 = vector.load %arg7[%c1_86, %c0_87, %c0_88] : memref<2x32x64xf32, #tpu.memory_space<vmem>>, vector<1x32x64xf32>
    %183 = vector.shape_cast %182 : vector<1x32x64xf32> to vector<32x64xf32>
    %cst_89 = arith.constant dense<0.000000e+00> : vector<16x64xf32>
    %184 = tpu.matmul %181, %183, %cst_89 {dimension_numbers = #tpu.dot_dimension_numbers<[1], [0], [0], [1], [0, 0, 1, 1], [], []>} : vector<16x32xf32>, vector<32x64xf32>, vector<16x64xf32> -> vector<16x64xf32>
    %c1_90 = arith.constant 1 : index
    %c0_91 = arith.constant 0 : index
    %c0_92 = arith.constant 0 : index
    %185 = vector.load %arg8[%c1_90, %c0_91, %c0_92] : memref<2x1x64xf32, #tpu.memory_space<vmem>>, vector<1x1x64xf32>
    %186 = vector.shape_cast %185 : vector<1x1x64xf32> to vector<1x64xf32>
    %187 = vector.broadcast %186 : vector<1x64xf32> to vector<16x64xf32>
    %188 = arith.addf %184, %187 : vector<16x64xf32>
    %cst_93 = arith.constant 0.000000e+00 : f32
    %189 = vector.broadcast %cst_93 : f32 to vector<16x64xf32>
    %190 = arith.maximumf %188, %189 : vector<16x64xf32>
    %c1_94 = arith.constant 1 : index
    %c0_95 = arith.constant 0 : index
    %c0_96 = arith.constant 0 : index
    %191 = vector.load %arg9[%c1_94, %c0_95, %c0_96] : memref<2x64x32xf32, #tpu.memory_space<vmem>>, vector<1x64x32xf32>
    %192 = vector.shape_cast %191 : vector<1x64x32xf32> to vector<64x32xf32>
    %cst_97 = arith.constant dense<0.000000e+00> : vector<16x32xf32>
    %193 = tpu.matmul %190, %192, %cst_97 {dimension_numbers = #tpu.dot_dimension_numbers<[1], [0], [0], [1], [0, 0, 1, 1], [], []>} : vector<16x64xf32>, vector<64x32xf32>, vector<16x32xf32> -> vector<16x32xf32>
    %c1_98 = arith.constant 1 : index
    %c0_99 = arith.constant 0 : index
    %c0_100 = arith.constant 0 : index
    %194 = vector.load %arg10[%c1_98, %c0_99, %c0_100] : memref<2x1x32xf32, #tpu.memory_space<vmem>>, vector<1x1x32xf32>
    %195 = vector.shape_cast %194 : vector<1x1x32xf32> to vector<1x32xf32>
    %196 = vector.broadcast %195 : vector<1x32xf32> to vector<16x32xf32>
    %197 = arith.addf %193, %196 : vector<16x32xf32>
    %198 = arith.addf %197, %181 : vector<16x32xf32>
    %cst_101 = arith.constant dense<0.000000e+00> : vector<16xf32>
    %199 = vector.multi_reduction <add>, %198, %cst_101 [1] : vector<16x32xf32> to vector<16xf32>
    %200 = vector.shape_cast %199 : vector<16xf32> to vector<16x1xf32>
    %cst_102 = arith.constant 3.200000e+01 : f32
    %201 = vector.broadcast %cst_102 : f32 to vector<16x1xf32>
    %202 = arith.divf %200, %201 : vector<16x1xf32>
    %203 = vector.broadcast %202 : vector<16x1xf32> to vector<16x32xf32>
    %204 = arith.subf %198, %203 : vector<16x32xf32>
    %205 = arith.mulf %204, %204 : vector<16x32xf32>
    %cst_103 = arith.constant dense<0.000000e+00> : vector<16xf32>
    %206 = vector.multi_reduction <add>, %205, %cst_103 [1] : vector<16x32xf32> to vector<16xf32>
    %207 = vector.shape_cast %206 : vector<16xf32> to vector<16x1xf32>
    %cst_104 = arith.constant 3.200000e+01 : f32
    %208 = vector.broadcast %cst_104 : f32 to vector<16x1xf32>
    %209 = arith.divf %207, %208 : vector<16x1xf32>
    %210 = vector.broadcast %202 : vector<16x1xf32> to vector<16x32xf32>
    %211 = arith.subf %198, %210 : vector<16x32xf32>
    %cst_105 = arith.constant 9.99999974E-6 : f32
    %212 = vector.broadcast %cst_105 : f32 to vector<16x1xf32>
    %213 = arith.addf %209, %212 : vector<16x1xf32>
    %214 = math.rsqrt %213 : vector<16x1xf32>
    %215 = vector.broadcast %214 : vector<16x1xf32> to vector<16x32xf32>
    %216 = arith.mulf %211, %215 : vector<16x32xf32>
    %c1_106 = arith.constant 1 : index
    %c0_107 = arith.constant 0 : index
    %c0_108 = arith.constant 0 : index
    %217 = vector.load %arg11[%c1_106, %c0_107, %c0_108] : memref<2x1x32xf32, #tpu.memory_space<vmem>>, vector<1x1x32xf32>
    %218 = vector.shape_cast %217 : vector<1x1x32xf32> to vector<1x32xf32>
    %219 = vector.broadcast %218 : vector<1x32xf32> to vector<16x32xf32>
    %220 = arith.mulf %216, %219 : vector<16x32xf32>
    %c1_109 = arith.constant 1 : index
    %c0_110 = arith.constant 0 : index
    %c0_111 = arith.constant 0 : index
    %221 = vector.load %arg12[%c1_109, %c0_110, %c0_111] : memref<2x1x32xf32, #tpu.memory_space<vmem>>, vector<1x1x32xf32>
    %222 = vector.shape_cast %221 : vector<1x1x32xf32> to vector<1x32xf32>
    %223 = vector.broadcast %222 : vector<1x32xf32> to vector<16x32xf32>
    %224 = arith.addf %220, %223 : vector<16x32xf32>
    %c0_112 = arith.constant 0 : index
    %c0_113 = arith.constant 0 : index
    %225 = vector.load %arg13[%c0_112, %c0_113] : memref<16x32xf32, #tpu.memory_space<vmem>>, vector<16x32xf32>
    tpu.vector_store %arg13[%c0_112, %c0_113], %224 {strides = array<i32>} : memref<16x32xf32, #tpu.memory_space<vmem>>, vector<16x32xf32>,
    return
  }
}

</mosaic_0001>

<bundles_post_ra>
// kernel: transformer_encoder.1
= control target key start
LH: loop header
LB: loop body
LE: loop exit
PB: predicated region body
PF: predicated region fallthrough
CT: control target
= control target key end

     0   :  { %vm67_vm0 = vcmask 261120   ;;  %s2767_s0 = inlined_call_operand.vmem [shape: f32[16,32], index: 0, kind: input, shape index: {}]   ;;  %s2768_s1 = inlined_call_operand.vmem [shape: f32[16,16], index: 1, kind: input, shape index: {}]   ;;  %s2769_s2 = inlined_call_operand.vmem [shape: f32[2,4,32,24], index: 2, kind: input, shape index: {}]   ;;  %s2770_s3 = inlined_call_operand.vmem [shape: f32[2,4,8,32], index: 3, kind: input, shape index: {}]   ;;  %s2771_s4 = inlined_call_operand.vmem [shape: f32[2,1,32], index: 4, kind: input, shape index: {}]   ;;  %s2772_s5 = inlined_call_operand.vmem [shape: f32[2,1,32], index: 5, kind: input, shape index: {}]   ;;  %s2773_s6 = inlined_call_operand.vmem [shape: f32[2,1,32], index: 6, kind: input, shape index: {}]   ;;  %s2774_s7 = inlined_call_operand.vmem [shape: f32[2,32,64], index: 7, kind: input, shape index: {}]   ;;  %s2775_s8 = inlined_call_operand.vmem [shape: f32[2,1,64], index: 8, kind: input, shape index: {}]   ;;  %s2776_s9 = inlined_call_operand.vmem [shape: f32[2,64,32], index: 9, kind: input, shape index: {}]   ;;  %s2777_s10 = inlined_call_operand.vmem [shape: f32[2,1,32], index: 10, kind: input, shape index: {}]   ;;  %s2778_s11 = inlined_call_operand.vmem [shape: f32[2,1,32], index: 11, kind: input, shape index: {}]   ;;  %s2779_s12 = inlined_call_operand.vmem [shape: f32[2,1,32], index: 12, kind: input, shape index: {}]   ;;  %s2780_s13 = inlined_call_operand.hbm [shape: f32[16,32], index: 13, kind: output, shape index: {0}]   ;;  %s2781_s14 = inlined_call_operand.vmem [shape: f32[4,16,16], index: 14, kind: output, shape index: {1}]  }
   0x1   :  { %v62_v0 = vld [vmem:[%s2769_s2 + $0x58] sm:$0xff]  ;;  %v61_v2 = vld [vmem:[%s2769_s2 + $0x50] sm:$0xff]  ;;  %v60_v4 = vld [vmem:[%s2769_s2 + $0x48] sm:$0xff] }
   0x2   :  { %v66_v1 = vld [vmem:[%s2769_s2 + $0x78] sm:$0xff]  ;;  %132 = vmatpush.msra.mxu2 %v62_v0  ;;  %v65_v3 = vld [vmem:[%s2769_s2 + $0x70] sm:$0xff]  ;;  %v64_v5 = vld [vmem:[%s2769_s2 + $0x68] sm:$0xff] }
   0x3   :  { %155 = vmatpush.msra.mxu3 %v66_v1  ;;  %v58_v6 = vld [vmem:[%s2769_s2 + $0x38] sm:$0xff]  ;;  %v57_v7 = vld [vmem:[%s2769_s2 + $0x30] sm:$0xff]  ;;  %v59_v8 = vld [vmem:[%s2769_s2 + $0x40] sm:$0xff] }
   0x4   :  { %133 = vmatpush.msra.mxu2 %v61_v2  ;;  %v63_v9 = vld [vmem:[%s2769_s2 + $0x60] sm:$0xff]  ;;  %109 = vmatpush.msra.mxu1 %v58_v6  ;;  %v54_v10 = vld [vmem:[%s2769_s2 + $0x18] sm:$0xff]  ;;  %v56_v12 = vld [vmem:[%s2769_s2 + $0x28] sm:$0xff] }
   0x5   :  { %156 = vmatpush.msra.mxu3 %v65_v3  ;;  %v2153_v11 = vld [vmem:[%s2767_s0] sm:$0xff]  ;;  %v53_v13 = vld [vmem:[%s2769_s2 + $0x10] sm:$0xff]  ;;  %86 = vmatpush.msra.mxu0 %v54_v10  ;;  %v52_v15 = vld [vmem:[%s2769_s2 + $0x8] sm:$0xff] }
   0x6   :  { %134 = vmatpush.msra.mxu2 %v60_v4  ;;  %110 = vmatpush.msra.mxu1 %v57_v7  ;;  %v55_v14 = vld [vmem:[%s2769_s2 + $0x20] sm:$0xff] }
   0x7   :  { %157 = vmatpush.msra.mxu3 %v64_v5  ;;  %v51_v16 = vld [vmem:[%s2769_s2] sm:$0xff]  ;;  %87 = vmatpush.msra.mxu0 %v53_v13 }
   0x8   :  { %135 = vmatpush.msra.mxu2 %v59_v8  ;;  %111 = vmatpush.msra.mxu1 %v56_v12 }
   0x9   :  { %158 = vmatpush.msra.mxu3 %v63_v9  ;;  %1745 = vmatmul.msk.f32.vlgmr.msra.gmra.mxu2 %vm67_vm0, %v2153_v11 }
   0xa   :  { %1747 = vmatmul.msk.f32.vlgmr.msra.gmra.mxu3 %vm67_vm0, %v2153_v11 }
   0xb   :  { %20 = vsyncpa [#allocation3], 0  ;;  %112 = vmatpush.msra.mxu1 %v55_v14  ;;  %88 = vmatpush.msra.mxu0 %v52_v15  ;;  %v2179_v17 = vld [vmem:[%s2767_s0 + $0x8] sm:$0xff]  ;;  %s2036_s0 = smov 120   ;;  %vm172_vm1 = vcmask 64512   ;;  %v2250_v34 = vld [vmem:[%s2768_s1] sm:$0xff] }
   0xc   :  { %1743 = vmatmul.msk.f32.vlgmr.msra.gmra.mxu1 %vm67_vm0, %v2153_v11  ;;  %vm315_vm2 = vcmask 130048   ;;  %v2260_v44 = vld [vmem:[%s2768_s1 + $0x8] sm:$0xff]  ;;  %s2037_s1 = smov 112   ;;  %vm792_vm10 = vcmask 523264   ;;  %s2040_s30 = smov 128  }
   0xd   :  { %89 = vmatpush.msra.mxu0 %v51_v16 }
   0xe   :  { %1741 = vmatmul.msk.f32.vlgmr.msra.gmra.mxu0 %vm67_vm0, %v2153_v11 }
  0x11   :  { %1746 = vmatmul.msk.f32.gmra.mxu2 %vm67_vm0, %v2179_v17 }
  0x12   :  { %1748 = vmatmul.msk.f32.gmra.mxu3 %vm67_vm0, %v2179_v17 }
  0x14   :  { %1744 = vmatmul.msk.f32.gmra.mxu1 %vm67_vm0, %v2179_v17 }
  0x16   :  { %1742 = vmatmul.msk.f32.gmra.mxu0 %vm67_vm0, %v2179_v17 }
  0x89   :  { %v2199_v21 = vpop.f32.mrf.mxu1 }
  0x8b   :  { %v2195_v19 = vpop.f32.mrf.mxu0 }
  0x8c   :  { %v2191_v18 = vpop.f32.mrf.mxu2 }
  0x8d   :  { %243 = vrot.lane.b32.xlu1 %v2191_v18, %s2036_s0  ;;  %v2197_v20 = vpop.f32.mrf.mxu3 }
  0x91   :  { %v2211_v24 = vpop.f32.mrf.mxu1 }
  0x93   :  { %v2207_v23 = vpop.f32.mrf.mxu0 }
  0x94   :  { %v2201_v22 = vpop.f32.mrf.mxu2  ;;  %170 = vrot.lane.b32.xlu2 %v2207_v23, %s2036_s0 }
  0x95   :  { %280 = vrot.lane.b32.xlu1 %v2197_v20, %s2036_s0  ;;  %245 = vrot.lane.b32.xlu0 %v2201_v22, %s2036_s0  ;;  %v2213_v25 = vpop.f32.mrf.mxu3  ;;  %v1874_v60 = vpack.i.bf16 %v2191_v18, %v2201_v22 }
  0x9c   :  { %208 = vrot.lane.b32.xlu2 %v2211_v24, %s2036_s0 }
  0x9d   :  { %282 = vrot.lane.b32.xlu0 %v2213_v25, %s2036_s0  ;;  %206 = vrot.lane.b32.xlu1 %v2199_v21, %s2036_s0 }
  0xa5   :  { %168 = vrot.lane.b32.xlu0 %v2195_v19, %s2036_s0 }
  0xee   :  { %v171_v26 = vpop.permute.xlu2 %170 }
  0xef   :  { %1749 = vmatpush.xpose.msk.msrb.mxu0 %vm172_vm1, %v171_v26 }
  0xf6   :  { %v209_v27 = vpop.permute.xlu2 %208 }
  0xf7   :  { %1753 = vmatpush.xpose.msk.msrb.mxu1 %vm172_vm1, %v209_v27 }
  0xff   :  { %v244_v28 = vpop.permute.xlu1 %243 }
 0x107   :  { %v281_v29 = vpop.permute.xlu1 %280  ;;  %v246_v30 = vpop.permute.xlu0 %245 }
 0x108   :  { %1757 = vmatpush.xpose.msk.msrb.mxu2 %vm172_vm1, %v246_v30  ;;  %v1879_v30 = vpack.i.bf16 %v2197_v20, %v2213_v25 }
 0x10c   :  { %1758 = vmatpush.xpose.msk.msrb.mxu2 %vm172_vm1, %v244_v28 }
 0x10f   :  { %1759 = vmatmul.msk.f32.vlgmr.msrb.gmra.mxu2 %vm172_vm1, %v2191_v18  ;;  %v283_v31 = vpop.permute.xlu0 %282  ;;  %v207_v32 = vpop.permute.xlu1 %206 }
 0x110   :  { %1754 = vmatpush.xpose.msk.msrb.mxu1 %vm172_vm1, %v207_v32  ;;  %1761 = vmatpush.xpose.msk.msrb.mxu3 %vm172_vm1, %v283_v31 }
 0x113   :  { %1755 = vmatmul.msk.f32.vlgmr.msrb.gmra.mxu1 %vm172_vm1, %v2199_v21 }
 0x114   :  { %1762 = vmatpush.xpose.msk.msrb.mxu3 %vm172_vm1, %v281_v29 }
 0x117   :  { %1760 = vmatmul.msk.f32.gmra.mxu2 %vm172_vm1, %v2201_v22  ;;  %1763 = vmatmul.msk.f32.vlgmr.msrb.gmra.mxu3 %vm172_vm1, %v2197_v20  ;;  %v169_v33 = vpop.permute.xlu0 %168 }
 0x118   :  { %1750 = vmatpush.xpose.msk.msrb.mxu0 %vm172_vm1, %v169_v33 }
 0x11b   :  { %1751 = vmatmul.msk.f32.vlgmr.msrb.gmra.mxu0 %vm172_vm1, %v2195_v19  ;;  %1756 = vmatmul.msk.f32.gmra.mxu1 %vm172_vm1, %v2211_v24 }
 0x11f   :  { %1764 = vmatmul.msk.f32.gmra.mxu3 %vm172_vm1, %v2213_v25 }
 0x123   :  { %1752 = vmatmul.msk.f32.gmra.mxu0 %vm172_vm1, %v2207_v23 }
 0x190   :  { %v235_v36 = vpop.f32.mrf.mxu1 }
 0x191   :  { %v236_v43 = vadd.f32 %v235_v36, %v2250_v34 }
 0x192   :  { %v272_v38 = vpop.f32.mrf.mxu2 }
 0x193   :  { %v322_v50 = vsel %vm315_vm2, %v236_v43, -inf  ;;  %v273_v58 = vadd.f32 %v272_v38, %v2250_v34 }
 0x195   :  { %v328_v59 = vsel %vm315_vm2, %v273_v58, -inf }
 0x198   :  { %v198_v35 = vpop.f32.mrf.mxu0  ;;  %v238_v51 = vpop.f32.mrf.mxu1 }
 0x199   :  { %v199_v37 = vadd.f32 %v198_v35, %v2250_v34  ;;  %v2271_v54 = vadd.f32 %v238_v51, %v2260_v44 }
 0x19a   :  { %v309_v39 = vpop.f32.mrf.mxu3  ;;  %v275_v52 = vpop.f32.mrf.mxu2 }
 0x19b   :  { %v310_v40 = vadd.f32 %v309_v39, %v2250_v34  ;;  %v316_v41 = vsel %vm315_vm2, %v199_v37, -inf  ;;  %v276_v55 = vadd.f32 %v275_v52, %v2260_v44  ;;  %v325_v57 = vsel %vm315_vm2, %v2271_v54, -inf }
 0x19c   :  { %317 = vmax.xlane.f32.xlu2 %v316_v41 }
 0x19d   :  { %v334_v42 = vsel %vm315_vm2, %v310_v40, -inf  ;;  %v331_v56 = vsel %vm315_vm2, %v276_v55, -inf }
 0x19e   :  { %335 = vmax.xlane.f32.xlu0 %v334_v42 }
 0x1a0   :  { %v201_v45 = vpop.f32.mrf.mxu0 }
 0x1a1   :  { %v2263_v46 = vadd.f32 %v201_v45, %v2260_v44 }
 0x1a2   :  { %v312_v47 = vpop.f32.mrf.mxu3 }
 0x1a3   :  { %v313_v48 = vadd.f32 %v312_v47, %v2260_v44  ;;  %v319_v49 = vsel %vm315_vm2, %v2263_v46, -inf }
 0x1a4   :  { %320 = vmax.xlane.f32.xlu1 %v319_v49  ;;  %323 = vmax.xlane.f32.xlu2 %v322_v50 }
 0x1a5   :  { %v337_v53 = vsel %vm315_vm2, %v313_v48, -inf }
 0x1a6   :  { %338 = vmax.xlane.f32.xlu0 %v337_v53 }
 0x1ac   :  { %332 = vmax.xlane.f32.xlu1 %v331_v56  ;;  %326 = vmax.xlane.f32.xlu2 %v325_v57 }
 0x1b4   :  { %329 = vmax.xlane.f32.xlu2 %v328_v59 }
 0x1cc   :  { %1875 = vrot.lane.b32.xlu2 %v1874_v60, %s2037_s1 }
 0x20f   :  { %v318_v61 = vpop.xlane.xlu2 %317 }
 0x210   :  { %v340_v13 = vsub.f32 %v199_v37, %v318_v61  ;;  %v1889_v37 = vpack.i.bf16 %v2199_v21, %v2195_v19  ;;  %v1884_v21 = vpack.i.bf16 %v2211_v24, %v2207_v23 }
 0x211   :  { %v336_v62 = vpop.xlane.xlu0 %335 }
 0x212   :  { %v346_v63 = vsub.f32 %v310_v40, %v336_v62  ;;  %v348_v16 = vmul.f32 1.442695, %v340_v13 }
 0x214   :  { %v360_v0 = vmul.f32 1.442695, %v346_v63 }
 0x216   :  { %1928 = vpow2.f32 %v360_v0 }
 0x217   :  { %v324_v1 = vpop.xlane.xlu2 %323  ;;  %v321_v15 = vpop.xlane.xlu1 %320 }
 0x218   :  { %v342_v27 = vsub.f32 %v236_v43, %v324_v1  ;;  %v341_v41 = vsub.f32 %v2263_v46, %v321_v15 }
 0x219   :  { %v339_v2 = vpop.xlane.xlu0 %338 }
 0x21a   :  { %v347_v3 = vsub.f32 %v313_v48, %v339_v2  ;;  %v352_v31 = vmul.f32 1.442695, %v342_v27  ;;  %v350_v42 = vmul.f32 1.442695, %v341_v41 }
 0x21c   :  { %v2282_v4 = vpop.eup %1928  ;;  %v362_v5 = vmul.f32 1.442695, %v347_v3 }
 0x21d   :  { %v382_v6 = vsel %vm315_vm2, %v2282_v4, 0.0 }
 0x21e   :  { %1930 = vpow2.f32 %v362_v5  ;;  %383 = vadd.xlane.f32.xlu1 %v382_v6 }
 0x21f   :  { %v327_v7 = vpop.xlane.xlu2 %326  ;;  %v333_v32 = vpop.xlane.xlu1 %332 }
 0x220   :  { %v345_v35 = vsub.f32 %v276_v55, %v333_v32  ;;  %v343_v45 = vsub.f32 %v2271_v54, %v327_v7 }
 0x222   :  { %v358_v38 = vmul.f32 1.442695, %v345_v35  ;;  %v354_v47 = vmul.f32 1.442695, %v343_v45 }
 0x224   :  { %v2286_v8 = vpop.eup %1930 }
 0x225   :  { %v385_v9 = vsel %vm315_vm2, %v2286_v8, 0.0 }
 0x226   :  { %386 = vadd.xlane.f32.xlu2 %v385_v9 }
 0x227   :  { %v330_v10 = vpop.xlane.xlu2 %329 }
 0x228   :  { %v344_v12 = vsub.f32 %v273_v58, %v330_v10 }
 0x22a   :  { %v356_v14 = vmul.f32 1.442695, %v344_v12 }
 0x22c   :  { %1932 = vpow2.f32 %v356_v14 }
 0x22d   :  { %1934 = vpow2.f32 %v348_v16 }
 0x22e   :  { %1936 = vpow2.f32 %v352_v31 }
 0x22f   :  { %v1876_v18 = vpop.permute.xlu2 %1875  ;;  %1938 = vpow2.f32 %v358_v38 }
 0x230   :  { %v1877_v22 = vunpack.i.l.bf16 %v1876_v18  ;;  %v1878_v28 = vunpack.i.h.bf16 %v1876_v18  ;;  %1940 = vpow2.f32 %v350_v42  ;;  %v547_v18 = vld [vmem:[%s2770_s3 + $0x18] sm:$0xff] }
 0x231   :  { %1942 = vpow2.f32 %v354_v47 }
 0x232   :  { %v1933_v26 = vpop.eup %1932  ;;  %500 = vmatpush.msra.mxu2 %v1877_v22  ;;  %v546_v22 = vld [vmem:[%s2770_s3 + $0x10] sm:$0xff] }
 0x233   :  { %v376_v29 = vsel %vm315_vm2, %v1933_v26, 0.0  ;;  %v2294_v33 = vpop.eup %1934 }
 0x234   :  { %377 = vadd.xlane.f32.xlu0 %v376_v29  ;;  %501 = vmatpush.msra.mxu2 %v1878_v28  ;;  %v364_v36 = vsel %vm315_vm2, %v2294_v33, 0.0  ;;  %v2301_v39 = vpop.eup %1936  ;;  %v544_v28 = vld [vmem:[%s2770_s3] sm:$0xff]  ;;  %v545_v29 = vld [vmem:[%s2770_s3 + $0x8] sm:$0xff] }
 0x235   :  { %v370_v20 = vsel %vm315_vm2, %v2301_v39, 0.0  ;;  %v1939_v25 = vpop.eup %1938 }
 0x236   :  { %v379_v40 = vsel %vm315_vm2, %v1939_v25, 0.0  ;;  %v1941_v19 = vpop.eup %1940  ;;  %627 = vmatpush.msrb.mxu2 %v546_v22  ;;  %v1915_v22 = vld [vmem:[%s2772_s5] ss:$0 sm:$0xff] }
 0x237   :  { %1880 = vrot.lane.b32.xlu1 %v1879_v30, %s2037_s1  ;;  %v367_v43 = vsel %vm315_vm2, %v1941_v19, 0.0  ;;  %v1943_v48 = vpop.eup %1942 }
 0x238   :  { %v373_v49 = vsel %vm315_vm2, %v1943_v48, 0.0 }
 0x23c   :  { %365 = vadd.xlane.f32.xlu0 %v364_v36 }
 0x23e   :  { %1890 = vrot.lane.b32.xlu2 %v1889_v37, %s2037_s1 }
 0x244   :  { %371 = vadd.xlane.f32.xlu0 %v370_v20 }
 0x24c   :  { %380 = vadd.xlane.f32.xlu0 %v379_v40  ;;  %v1914_v40 = vld [vmem:[%s2771_s4] ss:$0 sm:$0xff] }
 0x260   :  { %1885 = vrot.lane.b32.xlu0 %v1884_v21, %s2037_s1 }
 0x261   :  { %368 = vadd.xlane.f32.xlu1 %v367_v43 }
 0x28a   :  { %374 = vadd.xlane.f32.xlu0 %v373_v49 }
 0x291   :  { %v384_v46 = vpop.xlane.xlu1 %383 }
 0x292   :  { %1944 = vrcp.f32 %v384_v46 }
 0x298   :  { %v1945_v23 = vpop.eup %1944 }
 0x299   :  { %v387_v51 = vpop.xlane.xlu2 %386  ;;  %v402_v55 = vmul.f32 %v1945_v23, %v2282_v4 }
 0x2a1   :  { %v1891_v1 = vpop.permute.xlu2 %1890 }
 0x2a2   :  { %v1893_v7 = vunpack.i.h.bf16 %v1891_v1 }
 0x2a7   :  { %v378_v50 = vpop.xlane.xlu0 %377 }
 0x2a8   :  { %1946 = vrcp.f32 %v378_v50 }
 0x2a9   :  { %v1881_v52 = vpop.permute.xlu1 %1880  ;;  %1948 = vrcp.f32 %v387_v51 }
 0x2aa   :  { %v1882_v24 = vunpack.i.l.bf16 %v1881_v52  ;;  %v1883_v53 = vunpack.i.h.bf16 %v1881_v52 }
 0x2ac   :  { %535 = vmatpush.msra.mxu3 %v1882_v24 }
 0x2ae   :  { %v1947_v54 = vpop.eup %1946  ;;  %536 = vmatpush.msra.mxu3 %v1883_v53  ;;  %v2038_v53 = vmov 32.0  }
 0x2af   :  { %v400_v56 = vmul.f32 %v1947_v54, %v1933_v26  ;;  %1771 = vmatmul.msk.f32.vlgmr.msra.gmra.mxu3 %vm315_vm2, %v402_v55  ;;  %v366_v57 = vpop.xlane.xlu0 %365  ;;  %v1949_v58 = vpop.eup %1948 }
 0x2b0   :  { %v403_v59 = vmul.f32 %v1949_v58, %v2286_v8  ;;  %v1892_v8 = vunpack.i.l.bf16 %v1891_v1  ;;  %656 = vmatpush.msrb.mxu3 %v547_v18 }
 0x2b1   :  { %1769 = vmatmul.msk.f32.vlgmr.msra.gmra.mxu2 %vm315_vm2, %v400_v56 }
 0x2b7   :  { %v372_v60 = vpop.xlane.xlu0 %371  ;;  %1772 = vmatmul.msk.f32.gmra.mxu3 %vm315_vm2, %v403_v59 }
 0x2bf   :  { %v381_v61 = vpop.xlane.xlu0 %380 }
 0x2c0   :  { %1950 = vrcp.f32 %v381_v61 }
 0x2c1   :  { %1952 = vrcp.f32 %v366_v57 }
 0x2c2   :  { %1954 = vrcp.f32 %v372_v60 }
 0x2c6   :  { %v1951_v62 = vpop.eup %1950 }
 0x2c7   :  { %v401_v63 = vmul.f32 %v1951_v62, %v1939_v25  ;;  %v1953_v0 = vpop.eup %1952 }
 0x2c8   :  { %v1955_v3 = vpop.eup %1954  ;;  %v396_v9 = vmul.f32 %v1953_v0, %v2294_v33 }
 0x2c9   :  { %1770 = vmatmul.msk.f32.gmra.mxu2 %vm315_vm2, %v401_v63  ;;  %v398_v10 = vmul.f32 %v1955_v3, %v2301_v39 }
 0x2d2   :  { %v1886_v2 = vpop.permute.xlu0 %1885 }
 0x2d3   :  { %v1888_v4 = vunpack.i.h.bf16 %v1886_v2  ;;  %v1887_v5 = vunpack.i.l.bf16 %v1886_v2 }
 0x2d4   :  { %v369_v6 = vpop.xlane.xlu1 %368 }
 0x2d5   :  { %1956 = vrcp.f32 %v369_v6  ;;  %430 = vmatpush.msra.mxu0 %v1887_v5  ;;  %465 = vmatpush.msra.mxu1 %v1888_v4  ;;  %v744_v4 = vld [vmem:[%s2774_s7 + $0x18] sm:$0xff]  ;;  %v743_v5 = vld [vmem:[%s2774_s7 + $0x10] sm:$0xff]  ;;  %v742_v6 = vld [vmem:[%s2774_s7 + $0x8] sm:$0xff] }
 0x2d7   :  { %431 = vmatpush.msra.mxu0 %v1892_v8  ;;  %466 = vmatpush.msra.mxu1 %v1893_v7  ;;  %v741_v7 = vld [vmem:[%s2774_s7] sm:$0xff] }
 0x2d8   :  { %1765 = vmatmul.msk.f32.vlgmr.msra.gmra.mxu0 %vm315_vm2, %v396_v9  ;;  %1767 = vmatmul.msk.f32.vlgmr.msra.gmra.mxu1 %vm315_vm2, %v398_v10 }
 0x2d9   :  { %569 = vmatpush.msrb.mxu0 %v544_v28  ;;  %598 = vmatpush.msrb.mxu1 %v545_v29  ;;  %v1916_v28 = vld [vmem:[%s2773_s6] ss:$0 sm:$0xff] }
 0x2db   :  { %v1957_v12 = vpop.eup %1956  ;;  %767 = vmatpush.msra.mxu0 %v744_v4 }
 0x2dc   :  { %v397_v13 = vmul.f32 %v1957_v12, %v1941_v19 }
 0x2dd   :  { %768 = vmatpush.msra.mxu0 %v743_v5 }
 0x2df   :  { %769 = vmatpush.msra.mxu0 %v742_v6 }
 0x2e0   :  { %1766 = vmatmul.msk.f32.gmra.mxu0 %vm315_vm2, %v397_v13 }
 0x2e1   :  { %770 = vmatpush.msra.mxu0 %v741_v7 }
 0x2fd   :  { %v375_v14 = vpop.xlane.xlu0 %374 }
 0x2fe   :  { %1958 = vrcp.f32 %v375_v14 }
 0x2ff   :  { %1960 = vrcp.f32 %v2038_v53 }
 0x304   :  { %v1959_v15 = vpop.eup %1958 }
 0x305   :  { %v399_v16 = vmul.f32 %v1959_v15, %v1943_v48  ;;  %v1961_v55 = vpop.eup %1960 }
 0x306   :  { %vm689_vm3 = vweird.f32 %v1961_v55 }
 0x307   :  { %1768 = vmatmul.msk.f32.gmra.mxu1 %vm315_vm2, %v399_v16 }
 0x332   :  { %v538_v26 = vpop.f32.mrf.mxu3 }
 0x333   :  { %1779 = vmatmul.msk.f32.vlgmr.msrb.gmra.mxu3 %vm172_vm1, %v538_v26 }
 0x334   :  { %v503_v27 = vpop.f32.mrf.mxu2 }
 0x335   :  { %1777 = vmatmul.msk.f32.vlgmr.msrb.gmra.mxu2 %vm172_vm1, %v503_v27 }
 0x33a   :  { %v541_v30 = vpop.f32.mrf.mxu3 }
 0x33b   :  { %1780 = vmatmul.msk.f32.gmra.mxu3 %vm172_vm1, %v541_v30 }
 0x34c   :  { %v506_v31 = vpop.f32.mrf.mxu2 }
 0x34d   :  { %1778 = vmatmul.msk.f32.gmra.mxu2 %vm172_vm1, %v506_v31  ;;  %v787_v31 = vld [vmem:[%s2776_s9 + $0x38] sm:$0xff] }
 0x34e   :  { %807 = vmatpush.msra.mxu1 %v787_v31  ;;  %v1793_v31 = vld [vmem:[%s2769_s2 + $0xc0] sm:$0xff] }
 0x355   :  { %v433_v32 = vpop.f32.mrf.mxu0  ;;  %v468_v33 = vpop.f32.mrf.mxu1 }
 0x356   :  { %1773 = vmatmul.msk.f32.vlgmr.msrb.gmra.mxu0 %vm172_vm1, %v433_v32  ;;  %1775 = vmatmul.msk.f32.vlgmr.msrb.gmra.mxu1 %vm172_vm1, %v468_v33  ;;  %v786_v32 = vld [vmem:[%s2776_s9 + $0x30] sm:$0xff]  ;;  %v785_v33 = vld [vmem:[%s2776_s9 + $0x28] sm:$0xff] }
 0x357   :  { %808 = vmatpush.msra.mxu1 %v786_v32  ;;  %v1797_v32 = vld [vmem:[%s2769_s2 + $0xe0] sm:$0xff] }
 0x359   :  { %809 = vmatpush.msra.mxu1 %v785_v33 }
 0x35d   :  { %v436_v35 = vpop.f32.mrf.mxu0 }
 0x35e   :  { %1774 = vmatmul.msk.f32.gmra.mxu0 %vm172_vm1, %v436_v35 }
 0x384   :  { %v471_v36 = vpop.f32.mrf.mxu1 }
 0x385   :  { %1776 = vmatmul.msk.f32.gmra.mxu1 %vm172_vm1, %v471_v36 }
 0x3b6   :  { %v658_v41 = vpop.f32.mrf.mxu3 }
 0x3b8   :  { %v629_v20 = vpop.f32.mrf.mxu2 }
 0x3be   :  { %v661_v50 = vpop.f32.mrf.mxu3 }
 0x3d0   :  { %v632_v49 = vpop.f32.mrf.mxu2 }
 0x3d3   :  { %v571_v37 = vpop.f32.mrf.mxu0  ;;  %v600_v38 = vpop.f32.mrf.mxu1 }
 0x3d4   :  { %v664_v39 = vadd.f32 %v600_v38, %v571_v37  ;;  %v784_v37 = vld [vmem:[%s2776_s9 + $0x20] sm:$0xff] }
 0x3d5   :  { %810 = vmatpush.msra.mxu1 %v784_v37 }
 0x3d6   :  { %v666_v25 = vadd.f32 %v664_v39, %v629_v20  ;;  %v783_v39 = vld [vmem:[%s2776_s9 + $0x18] sm:$0xff] }
 0x3d7   :  { %811 = vmatpush.msra.mxu1 %v783_v39 }
 0x3d8   :  { %v668_v42 = vadd.f32 %v666_v25, %v658_v41 }
 0x3da   :  { %v674_v19 = vadd.f32 %v1914_v40, %v668_v42 }
 0x3db   :  { %v574_v45 = vpop.f32.mrf.mxu0 }
 0x3dc   :  { %v676_v21 = vadd.f32 %v674_v19, %v2153_v11  ;;  %v685_v11 = vmul.f32 32.0, %v1961_v55 }
 0x3de   :  { %v678_v43 = vsel %vm67_vm0, %v676_v21, 0.0  ;;  %v686_v54 = vsub.f32 1.0, %v685_v11  ;;  %v1918_v11 = vld [vmem:[%s2777_s10] ss:$0 sm:$0xff] }
 0x3df   :  { %679 = vadd.xlane.f32.xlu1 %v678_v43 }
 0x3e0   :  { %v687_v56 = vmul.f32 %v1961_v55, %v686_v54 }
 0x3e2   :  { %v688_v57 = vadd.f32 %v1961_v55, %v687_v56 }
 0x3e4   :  { %v2352_v58 = vsel %vm689_vm3, %v1961_v55, %v688_v57 }
 0x402   :  { %v603_v47 = vpop.f32.mrf.mxu1 }
 0x403   :  { %v665_v48 = vadd.f32 %v603_v47, %v574_v45 }
 0x405   :  { %v667_v46 = vadd.f32 %v665_v48, %v632_v49  ;;  %v782_v48 = vld [vmem:[%s2776_s9 + $0x10] sm:$0xff]  ;;  %v781_v49 = vld [vmem:[%s2776_s9 + $0x8] sm:$0xff] }
 0x406   :  { %812 = vmatpush.msra.mxu1 %v782_v48 }
 0x407   :  { %v669_v51 = vadd.f32 %v667_v46, %v661_v50  ;;  %v780_v46 = vld [vmem:[%s2776_s9] sm:$0xff] }
 0x408   :  { %813 = vmatpush.msra.mxu1 %v781_v49  ;;  %v1917_v50 = vld [vmem:[%s2775_s8] ss:$0 sm:$0xff] }
 0x409   :  { %v675_v52 = vadd.f32 %v1914_v40, %v669_v51 }
 0x40a   :  { %814 = vmatpush.msra.mxu1 %v780_v46 }
 0x40b   :  { %v677_v23 = vadd.f32 %v675_v52, %v2179_v17 }
 0x40d   :  { %v681_v24 = vsel %vm67_vm0, %v677_v23, 0.0 }
 0x40e   :  { %682 = vadd.xlane.f32.xlu1 %v681_v24 }
 0x452   :  { %v680_v59 = vpop.xlane.xlu1 %679 }
 0x453   :  { %v691_v60 = vmul.f32 %v2352_v58, %v680_v59 }
 0x455   :  { %v693_v61 = vsub.f32 %v676_v21, %v691_v60 }
 0x457   :  { %v695_v62 = vmul.f32 %v693_v61, %v693_v61 }
 0x459   :  { %v697_v17 = vsel %vm67_vm0, %v695_v62, 0.0 }
 0x45a   :  { %698 = vadd.xlane.f32.xlu1 %v697_v17 }
 0x481   :  { %v683_v63 = vpop.xlane.xlu1 %682 }
 0x482   :  { %v692_v0 = vmul.f32 %v2352_v58, %v683_v63 }
 0x484   :  { %v694_v1 = vsub.f32 %v677_v23, %v692_v0 }
 0x486   :  { %v696_v2 = vmul.f32 %v694_v1, %v694_v1 }
 0x488   :  { %v700_v3 = vsel %vm67_vm0, %v696_v2, 0.0 }
 0x489   :  { %701 = vadd.xlane.f32.xlu0 %v700_v3 }
 0x4cd   :  { %v699_v8 = vpop.xlane.xlu1 %698 }
 0x4ce   :  { %v703_v9 = vmul.f32 %v699_v8, %v2352_v58 }
 0x4d0   :  { %v705_v10 = vadd.f32 1e-05, %v703_v9  ;;  %v1788_v9 = vld [vmem:[%s2769_s2 + $0x98] sm:$0xff] }
 0x4d1   :  { %915 = vmatpush.msra.mxu2 %v1788_v9 }
 0x4d2   :  { %1962 = vrsqrt.f32 %v705_v10  ;;  %vm713_vm5 = vweird.f32 %v705_v10 }
 0x4d8   :  { %v1963_v12 = vpop.eup %1962 }
 0x4d9   :  { %v708_v13 = vmul.f32 %v1963_v12, %v705_v10  ;;  %vm714_vm4 = vweird.f32 %v1963_v12  ;;  %v1792_v10 = vld [vmem:[%s2769_s2 + $0xb8] sm:$0xff] }
 0x4da   :  { %vm715_vm6 = vmor %vm713_vm5, %vm714_vm4  ;;  %938 = vmatpush.msra.mxu3 %v1792_v10 }
 0x4db   :  { %v709_v14 = vmul.f32 %v1963_v12, %v708_v13  ;;  %v1800_v13 = vld [vmem:[%s2769_s2 + $0xf8] sm:$0xff] }
 0x4dc   :  { %984 = vmatpush.msrb.mxu1 %v1800_v13 }
 0x4dd   :  { %v710_v15 = vmul.f32 0.5, %v709_v14  ;;  %v1787_v14 = vld [vmem:[%s2769_s2 + $0x90] sm:$0xff] }
 0x4de   :  { %916 = vmatpush.msra.mxu2 %v1787_v14 }
 0x4df   :  { %v711_v16 = vsub.f32 1.5, %v710_v15  ;;  %v1791_v15 = vld [vmem:[%s2769_s2 + $0xb0] sm:$0xff] }
 0x4e0   :  { %939 = vmatpush.msra.mxu3 %v1791_v15 }
 0x4e1   :  { %v712_v18 = vmul.f32 %v1963_v12, %v711_v16  ;;  %v1795_v16 = vld [vmem:[%s2769_s2 + $0xd0] sm:$0xff] }
 0x4e3   :  { %v716_v26 = vsel %vm715_vm6, %v1963_v12, %v712_v18  ;;  %v1796_v12 = vld [vmem:[%s2769_s2 + $0xd8] sm:$0xff]  ;;  %v1799_v18 = vld [vmem:[%s2769_s2 + $0xf0] sm:$0xff] }
 0x4e4   :  { %v727_v27 = vmul.f32 %v716_v26, %v693_v61  ;;  %961 = vmatpush.msrb.mxu0 %v1796_v12  ;;  %v1790_v26 = vld [vmem:[%s2769_s2 + $0xa8] sm:$0xff]  ;;  %985 = vmatpush.msrb.mxu1 %v1799_v18 }
 0x4e5   :  { %940 = vmatpush.msra.mxu3 %v1790_v26 }
 0x4e6   :  { %v733_v29 = vmul.f32 %v1915_v22, %v727_v27  ;;  %962 = vmatpush.msrb.mxu0 %v1795_v16  ;;  %v1794_v27 = vld [vmem:[%s2769_s2 + $0xc8] sm:$0xff] }
 0x4e8   :  { %v739_v30 = vadd.f32 %v1916_v28, %v733_v29  ;;  %v1785_v29 = vld [vmem:[%s2769_s2 + $0x80] sm:$0xff]  ;;  %963 = vmatpush.msrb.mxu0 %v1794_v27 }
 0x4ea   :  { %1781 = vmatmul.msk.f32.vlgmr.msra.gmra.mxu0 %vm67_vm0, %v739_v30 }
 0x4eb   :  { %964 = vmatpush.msrb.mxu0 %v1793_v31 }
 0x4fc   :  { %v702_v35 = vpop.xlane.xlu0 %701 }
 0x4fd   :  { %v704_v36 = vmul.f32 %v702_v35, %v2352_v58 }
 0x4ff   :  { %v706_v38 = vadd.f32 1e-05, %v704_v36 }
 0x501   :  { %1964 = vrsqrt.f32 %v706_v38  ;;  %vm723_vm8 = vweird.f32 %v706_v38 }
 0x507   :  { %v1965_v20 = vpop.eup %1964 }
 0x508   :  { %v718_v25 = vmul.f32 %v1965_v20, %v706_v38  ;;  %vm724_vm7 = vweird.f32 %v1965_v20 }
 0x509   :  { %vm725_vm9 = vmor %vm723_vm8, %vm724_vm7 }
 0x50a   :  { %v719_v40 = vmul.f32 %v1965_v20, %v718_v25 }
 0x50c   :  { %v720_v41 = vmul.f32 0.5, %v719_v40 }
 0x50e   :  { %v721_v42 = vsub.f32 1.5, %v720_v41  ;;  %v1919_v41 = vld [vmem:[%s2778_s11] ss:$0 sm:$0xff] }
 0x510   :  { %v722_v19 = vmul.f32 %v1965_v20, %v721_v42 }
 0x512   :  { %v726_v21 = vsel %vm725_vm9, %v1965_v20, %v722_v19 }
 0x513   :  { %v728_v43 = vmul.f32 %v726_v21, %v694_v1  ;;  %v1920_v21 = vld [vmem:[%s2779_s12] ss:$0 sm:$0xff] }
 0x515   :  { %v734_v45 = vmul.f32 %v1915_v22, %v728_v43  ;;  %v1786_v22 = vld [vmem:[%s2769_s2 + $0x88] sm:$0xff] }
 0x516   :  { %917 = vmatpush.msra.mxu2 %v1786_v22 }
 0x517   :  { %v740_v47 = vadd.f32 %v1916_v28, %v734_v45  ;;  %v1798_v28 = vld [vmem:[%s2769_s2 + $0xe8] sm:$0xff] }
 0x518   :  { %986 = vmatpush.msrb.mxu1 %v1798_v28  ;;  %918 = vmatpush.msra.mxu2 %v1785_v29 }
 0x519   :  { %1782 = vmatmul.msk.f32.gmra.mxu0 %vm67_vm0, %v740_v47 }
 0x51a   :  { %987 = vmatpush.msrb.mxu1 %v1797_v32 }
 0x567   :  { %v772_v51 = vpop.f32.mrf.mxu0 }
 0x568   :  { %v773_v52 = vadd.f32 %v1917_v50, %v772_v51 }
 0x56a   :  { %v778_v23 = vmax.f32 %v773_v52, 0.0 }
 0x56c   :  { %1783 = vmatmul.msk.f32.vlgmr.msra.gmra.mxu1 %vm792_vm10, %v778_v23 }
 0x596   :  { %v775_v24 = vpop.f32.mrf.mxu0 }
 0x597   :  { %v776_v53 = vadd.f32 %v1917_v50, %v775_v24 }
 0x599   :  { %v779_v55 = vmax.f32 %v776_v53, 0.0 }
 0x59b   :  { %1784 = vmatmul.msk.f32.gmra.mxu1 %vm792_vm10, %v779_v55 }
 0x5e9   :  { %v816_v54 = vpop.f32.mrf.mxu1 }
 0x5ea   :  { %v817_v56 = vadd.f32 %v1918_v11, %v816_v54 }
 0x5ec   :  { %v822_v57 = vadd.f32 %v817_v56, %v739_v30  ;;  %v1789_v30 = vld [vmem:[%s2769_s2 + $0xa0] sm:$0xff]  ;;  %s2041_s2 = smov 8  }
 0x5ed   :  { %941 = vmatpush.msra.mxu3 %v1789_v30 }
 0x5ee   :  { %v824_v59 = vsel %vm67_vm0, %v822_v57, 0.0 }
 0x5ef   :  { %825 = vadd.xlane.f32.xlu2 %v824_v59 }
 0x618   :  { %v819_v60 = vpop.f32.mrf.mxu1 }
 0x619   :  { %v820_v61 = vadd.f32 %v1918_v11, %v819_v60 }
 0x61b   :  { %v823_v62 = vadd.f32 %v820_v61, %v740_v47 }
 0x61d   :  { %v827_v17 = vsel %vm67_vm0, %v823_v62, 0.0 }
 0x61e   :  { %828 = vadd.xlane.f32.xlu1 %v827_v17 }
 0x662   :  { %v826_v63 = vpop.xlane.xlu2 %825 }
 0x663   :  { %v830_v0 = vmul.f32 %v826_v63, %v2352_v58 }
 0x665   :  { %v832_v1 = vsub.f32 %v822_v57, %v830_v0 }
 0x667   :  { %v834_v2 = vmul.f32 %v832_v1, %v832_v1 }
 0x669   :  { %v836_v3 = vsel %vm67_vm0, %v834_v2, 0.0 }
 0x66a   :  { %837 = vadd.xlane.f32.xlu0 %v836_v3 }
 0x691   :  { %v829_v4 = vpop.xlane.xlu1 %828 }
 0x692   :  { %v831_v5 = vmul.f32 %v829_v4, %v2352_v58 }
 0x694   :  { %v2417_v6 = vsub.f32 %v823_v62, %v831_v5 }
 0x696   :  { %v835_v7 = vmul.f32 %v2417_v6, %v2417_v6 }
 0x698   :  { %v839_v8 = vsel %vm67_vm0, %v835_v7, 0.0 }
 0x699   :  { %840 = vadd.xlane.f32.xlu1 %v839_v8 }
 0x6dd   :  { %v838_v33 = vpop.xlane.xlu0 %837 }
 0x6de   :  { %v842_v35 = vmul.f32 %v838_v33, %v2352_v58 }
 0x6e0   :  { %v844_v36 = vadd.f32 1e-05, %v842_v35 }
 0x6e2   :  { %1966 = vrsqrt.f32 %v844_v36  ;;  %vm852_vm12 = vweird.f32 %v844_v36 }
 0x6e8   :  { %v1967_v37 = vpop.eup %1966 }
 0x6e9   :  { %v847_v38 = vmul.f32 %v1967_v37, %v844_v36  ;;  %vm853_vm11 = vweird.f32 %v1967_v37 }
 0x6ea   :  { %vm854_vm13 = vmor %vm852_vm12, %vm853_vm11 }
 0x6eb   :  { %v848_v39 = vmul.f32 %v1967_v37, %v847_v38 }
 0x6ed   :  { %v849_v20 = vmul.f32 0.5, %v848_v39 }
 0x6ef   :  { %v850_v25 = vsub.f32 1.5, %v849_v20 }
 0x6f1   :  { %v851_v40 = vmul.f32 %v1967_v37, %v850_v25 }
 0x6f3   :  { %v855_v42 = vsel %vm854_vm13, %v1967_v37, %v851_v40 }
 0x6f4   :  { %v866_v19 = vmul.f32 %v855_v42, %v832_v1 }
 0x6f6   :  { %v872_v43 = vmul.f32 %v1919_v41, %v866_v19 }
 0x6f8   :  { %v2477_v45 = vadd.f32 %v1920_v21, %v872_v43 }
 0x6fa   :  { %1801 = vmatmul.msk.f32.vlgmr.msra.gmra.mxu2 %vm67_vm0, %v2477_v45  ;;  %1803 = vmatmul.msk.f32.vlgmr.msra.gmra.mxu3 %vm67_vm0, %v2477_v45 }
 0x6fb   :  { %1805 = vmatmul.msk.f32.vlgmr.msrb.gmra.mxu0 %vm67_vm0, %v2477_v45  ;;  %1807 = vmatmul.msk.f32.vlgmr.msrb.gmra.mxu1 %vm67_vm0, %v2477_v45 }
 0x70c   :  { %v841_v47 = vpop.xlane.xlu1 %840 }
 0x70d   :  { %v843_v48 = vmul.f32 %v841_v47, %v2352_v58 }
 0x70f   :  { %v845_v49 = vadd.f32 1e-05, %v843_v48 }
 0x711   :  { %1968 = vrsqrt.f32 %v845_v49  ;;  %vm862_vm15 = vweird.f32 %v845_v49 }
 0x717   :  { %v1969_v46 = vpop.eup %1968 }
 0x718   :  { %v857_v50 = vmul.f32 %v1969_v46, %v845_v49  ;;  %vm863_vm14 = vweird.f32 %v1969_v46 }
 0x719   :  { %vm864_vm3 = vmor %vm862_vm15, %vm863_vm14 }
 0x71a   :  { %v858_v51 = vmul.f32 %v1969_v46, %v857_v50 }
 0x71c   :  { %v859_v52 = vmul.f32 0.5, %v858_v51 }
 0x71e   :  { %v860_v23 = vsub.f32 1.5, %v859_v52 }
 0x720   :  { %v861_v24 = vmul.f32 %v1969_v46, %v860_v23 }
 0x722   :  { %v865_v53 = vsel %vm864_vm3, %v1969_v46, %v861_v24 }
 0x723   :  { %v867_v55 = vmul.f32 %v865_v53, %v2417_v6 }
 0x725   :  { %v873_v11 = vmul.f32 %v1919_v41, %v867_v55 }
 0x727   :  { %v2489_v54 = vadd.f32 %v1920_v21, %v873_v11 }
 0x729   :  { %1802 = vmatmul.msk.f32.gmra.mxu2 %vm67_vm0, %v2489_v54  ;;  %1804 = vmatmul.msk.f32.gmra.mxu3 %vm67_vm0, %v2489_v54 }
 0x72a   :  { %1806 = vmatmul.msk.f32.gmra.mxu0 %vm67_vm0, %v2489_v54  ;;  %1808 = vmatmul.msk.f32.gmra.mxu1 %vm67_vm0, %v2489_v54 }
 0x778   :  { %v2505_v59 = vpop.f32.mrf.mxu1  ;;  %v2515_v62 = vpop.f32.mrf.mxu0 }
 0x77d   :  { %v2499_v56 = vpop.f32.mrf.mxu3  ;;  %v2503_v57 = vpop.f32.mrf.mxu2 }
 0x77e   :  { %1034 = vrot.lane.b32.xlu2 %v2499_v56, %s2036_s0 }
 0x7a7   :  { %v2517_v17 = vpop.f32.mrf.mxu1  ;;  %v2523_v63 = vpop.f32.mrf.mxu0 }
 0x7ac   :  { %v2507_v60 = vpop.f32.mrf.mxu2  ;;  %v2509_v61 = vpop.f32.mrf.mxu3 }
 0x7ad   :  { %1036 = vrot.lane.b32.xlu1 %v2509_v61, %s2036_s0  ;;  %999 = vrot.lane.b32.xlu0 %v2507_v60, %s2036_s0  ;;  %v1894_v25 = vpack.i.bf16 %v2509_v61, %v2507_v60 }
 0x7b5   :  { %1110 = vrot.lane.b32.xlu1 %v2517_v17, %s2036_s0  ;;  %997 = vrot.lane.b32.xlu0 %v2503_v57, %s2036_s0 }
 0x7bd   :  { %1108 = vrot.lane.b32.xlu1 %v2505_v59, %s2036_s0  ;;  %1073 = vrot.lane.b32.xlu0 %v2523_v63, %s2036_s0 }
 0x7c5   :  { %1071 = vrot.lane.b32.xlu0 %v2515_v62, %s2036_s0 }
 0x7d8   :  { %v1035_v2 = vpop.permute.xlu2 %1034 }
 0x81f   :  { %v1037_v0 = vpop.permute.xlu1 %1036  ;;  %v1000_v1 = vpop.permute.xlu0 %999 }
 0x820   :  { %1809 = vmatpush.xpose.msk.msrb.mxu2 %vm172_vm1, %v1000_v1  ;;  %1813 = vmatpush.xpose.msk.msrb.mxu3 %vm172_vm1, %v1037_v0 }
 0x824   :  { %1814 = vmatpush.xpose.msk.msrb.mxu3 %vm172_vm1, %v1035_v2 }
 0x827   :  { %1815 = vmatmul.msk.f32.vlgmr.msrb.gmra.mxu3 %vm172_vm1, %v2499_v56  ;;  %v1111_v3 = vpop.permute.xlu1 %1110  ;;  %v998_v4 = vpop.permute.xlu0 %997 }
 0x828   :  { %1810 = vmatpush.xpose.msk.msrb.mxu2 %vm172_vm1, %v998_v4  ;;  %1821 = vmatpush.xpose.msk.msra.mxu1 %vm172_vm1, %v1111_v3 }
 0x82b   :  { %1811 = vmatmul.msk.f32.vlgmr.msrb.gmra.mxu2 %vm172_vm1, %v2503_v57 }
 0x82f   :  { %1816 = vmatmul.msk.f32.gmra.mxu3 %vm172_vm1, %v2509_v61  ;;  %v1109_v5 = vpop.permute.xlu1 %1108  ;;  %v1074_v6 = vpop.permute.xlu0 %1073 }
 0x830   :  { %1817 = vmatpush.xpose.msk.msra.mxu0 %vm172_vm1, %v1074_v6  ;;  %1822 = vmatpush.xpose.msk.msra.mxu1 %vm172_vm1, %v1109_v5 }
 0x833   :  { %1812 = vmatmul.msk.f32.gmra.mxu2 %vm172_vm1, %v2507_v60  ;;  %1823 = vmatmul.msk.f32.vlgmr.msra.gmra.mxu1 %vm172_vm1, %v2505_v59 }
 0x837   :  { %v1072_v7 = vpop.permute.xlu0 %1071 }
 0x838   :  { %1818 = vmatpush.xpose.msk.msra.mxu0 %vm172_vm1, %v1072_v7 }
 0x83b   :  { %1819 = vmatmul.msk.f32.vlgmr.msra.gmra.mxu0 %vm172_vm1, %v2515_v62  ;;  %1824 = vmatmul.msk.f32.gmra.mxu1 %vm172_vm1, %v2517_v17 }
 0x843   :  { %1820 = vmatmul.msk.f32.gmra.mxu0 %vm172_vm1, %v2523_v63 }
 0x8aa   :  { %v1063_v8 = vpop.f32.mrf.mxu3 }
 0x8ab   :  { %v1064_v9 = vadd.f32 %v1063_v8, %v2250_v34 }
 0x8ad   :  { %v1149_v10 = vsel %vm315_vm2, %v1064_v9, -inf }
 0x8ae   :  { %1150 = vmax.xlane.f32.xlu1 %v1149_v10  ;;  %v1026_v12 = vpop.f32.mrf.mxu2 }
 0x8af   :  { %v1027_v13 = vadd.f32 %v1026_v12, %v2250_v34 }
 0x8b0   :  { %v1137_v15 = vpop.f32.mrf.mxu1 }
 0x8b1   :  { %v1143_v14 = vsel %vm315_vm2, %v1027_v13, -inf  ;;  %v1138_v33 = vadd.f32 %v1137_v15, %v2250_v34  ;;  %v1899_v15 = vpack.i.bf16 %v2499_v56, %v2503_v57 }
 0x8b2   :  { %v1066_v16 = vpop.f32.mrf.mxu3  ;;  %1144 = vmax.xlane.f32.xlu0 %v1143_v14 }
 0x8b3   :  { %v1067_v18 = vadd.f32 %v1066_v16, %v2260_v44  ;;  %v1161_v38 = vsel %vm315_vm2, %v1138_v33, -inf }
 0x8b5   :  { %v1152_v30 = vsel %vm315_vm2, %v1067_v18, -inf }
 0x8b6   :  { %v1029_v22 = vpop.f32.mrf.mxu2 }
 0x8b7   :  { %v1030_v26 = vadd.f32 %v1029_v22, %v2260_v44 }
 0x8b8   :  { %v1100_v27 = vpop.f32.mrf.mxu0  ;;  %v1140_v32 = vpop.f32.mrf.mxu1 }
 0x8b9   :  { %v1101_v28 = vadd.f32 %v1100_v27, %v2250_v34  ;;  %v1146_v29 = vsel %vm315_vm2, %v1030_v26, -inf  ;;  %v2567_v35 = vadd.f32 %v1140_v32, %v2260_v44  ;;  %v1904_v34 = vpack.i.bf16 %v2515_v62, %v2523_v63 }
 0x8ba   :  { %1147 = vmax.xlane.f32.xlu2 %v1146_v29  ;;  %1153 = vmax.xlane.f32.xlu0 %v1152_v30 }
 0x8bb   :  { %v1155_v31 = vsel %vm315_vm2, %v1101_v28, -inf  ;;  %v1164_v20 = vsel %vm315_vm2, %v2567_v35, -inf }
 0x8bc   :  { %1156 = vmax.xlane.f32.xlu1 %v1155_v31 }
 0x8c0   :  { %v1103_v36 = vpop.f32.mrf.mxu0 }
 0x8c1   :  { %v1104_v37 = vadd.f32 %v1103_v36, %v2260_v44  ;;  %v1909_v44 = vpack.i.bf16 %v2505_v59, %v2517_v17 }
 0x8c2   :  { %1162 = vmax.xlane.f32.xlu2 %v1161_v38 }
 0x8c3   :  { %v1158_v39 = vsel %vm315_vm2, %v1104_v37, -inf }
 0x8c4   :  { %1159 = vmax.xlane.f32.xlu0 %v1158_v39  ;;  %1165 = vmax.xlane.f32.xlu1 %v1164_v20 }
 0x8dd   :  { %1895 = vrot.lane.b32.xlu1 %v1894_v25, %s2037_s1 }
 0x8e5   :  { %1905 = vrot.lane.b32.xlu1 %v1904_v34, %s2037_s1 }
 0x8ed   :  { %1910 = vrot.lane.b32.xlu1 %v1909_v44, %s2037_s1 }
 0x921   :  { %v1151_v40 = vpop.xlane.xlu1 %1150 }
 0x922   :  { %v1169_v41 = vsub.f32 %v1064_v9, %v1151_v40 }
 0x924   :  { %v1179_v42 = vmul.f32 1.442695, %v1169_v41 }
 0x925   :  { %v1145_v19 = vpop.xlane.xlu0 %1144 }
 0x926   :  { %1970 = vpow2.f32 %v1179_v42  ;;  %v1167_v21 = vsub.f32 %v1027_v13, %v1145_v19 }
 0x928   :  { %v1175_v43 = vmul.f32 1.442695, %v1167_v21 }
 0x92a   :  { %1972 = vpow2.f32 %v1175_v43 }
 0x92c   :  { %v2583_v47 = vpop.eup %1970 }
 0x92d   :  { %v1148_v48 = vpop.xlane.xlu2 %1147  ;;  %v1197_v49 = vsel %vm315_vm2, %v2583_v47, 0.0  ;;  %v1154_v50 = vpop.xlane.xlu0 %1153 }
 0x92e   :  { %v1168_v46 = vsub.f32 %v1030_v26, %v1148_v48  ;;  %1198 = vadd.xlane.f32.xlu0 %v1197_v49  ;;  %v1170_v55 = vsub.f32 %v1067_v18, %v1154_v50 }
 0x92f   :  { %v1157_v51 = vpop.xlane.xlu1 %1156 }
 0x930   :  { %v2587_v52 = vpop.eup %1972  ;;  %v1177_v23 = vmul.f32 1.442695, %v1168_v46  ;;  %v1171_v24 = vsub.f32 %v1101_v28, %v1157_v51  ;;  %v1181_v59 = vmul.f32 1.442695, %v1170_v55  ;;  %v1835_v55 = vld [vmem:[%s2770_s3 + $0x30] sm:$0xff] }
 0x931   :  { %v1191_v53 = vsel %vm315_vm2, %v2587_v52, 0.0 }
 0x932   :  { %1974 = vpow2.f32 %v1177_v23  ;;  %v1183_v11 = vmul.f32 1.442695, %v1171_v24  ;;  %1192 = vadd.xlane.f32.xlu2 %v1191_v53 }
 0x934   :  { %1976 = vpow2.f32 %v1183_v11  ;;  %v1833_v11 = vld [vmem:[%s2770_s3 + $0x20] sm:$0xff] }
 0x935   :  { %v1163_v60 = vpop.xlane.xlu2 %1162  ;;  %1978 = vpow2.f32 %v1181_v59  ;;  %v1834_v59 = vld [vmem:[%s2770_s3 + $0x28] sm:$0xff] }
 0x936   :  { %v1173_v63 = vsub.f32 %v1138_v33, %v1163_v60  ;;  %v1836_v60 = vld [vmem:[%s2770_s3 + $0x38] sm:$0xff] }
 0x937   :  { %v1160_v2 = vpop.xlane.xlu0 %1159  ;;  %v1166_v7 = vpop.xlane.xlu1 %1165 }
 0x938   :  { %v2591_v61 = vpop.eup %1974  ;;  %v1187_v1 = vmul.f32 1.442695, %v1173_v63  ;;  %v1172_v4 = vsub.f32 %v1104_v37, %v1160_v2  ;;  %v1174_v56 = vsub.f32 %v2567_v35, %v1166_v7 }
 0x939   :  { %v1194_v62 = vsel %vm315_vm2, %v2591_v61, 0.0 }
 0x93a   :  { %v2595_v17 = vpop.eup %1976  ;;  %1195 = vadd.xlane.f32.xlu2 %v1194_v62  ;;  %1980 = vpow2.f32 %v1187_v1  ;;  %v1185_v6 = vmul.f32 1.442695, %v1172_v4  ;;  %v1189_v57 = vmul.f32 1.442695, %v1174_v56 }
 0x93b   :  { %v1203_v0 = vsel %vm315_vm2, %v2595_v17, 0.0  ;;  %v2599_v3 = vpop.eup %1978 }
 0x93c   :  { %1204 = vadd.xlane.f32.xlu0 %v1203_v0  ;;  %v1200_v5 = vsel %vm315_vm2, %v2599_v3, 0.0  ;;  %1982 = vpow2.f32 %v1185_v6 }
 0x93d   :  { %1984 = vpow2.f32 %v1189_v57 }
 0x940   :  { %v2603_v8 = vpop.eup %1980 }
 0x941   :  { %v1209_v9 = vsel %vm315_vm2, %v2603_v8, 0.0 }
 0x942   :  { %v2607_v12 = vpop.eup %1982 }
 0x943   :  { %v1206_v16 = vsel %vm315_vm2, %v2607_v12, 0.0  ;;  %v1985_v30 = vpop.eup %1984 }
 0x944   :  { %1201 = vadd.xlane.f32.xlu0 %v1200_v5  ;;  %v1212_v31 = vsel %vm315_vm2, %v1985_v30, 0.0 }
 0x94c   :  { %1210 = vadd.xlane.f32.xlu0 %v1209_v9  ;;  %v1921_v9 = vld [vmem:[%s2771_s4 + $0x1] ss:$0 sm:$0xff] }
 0x94f   :  { %v1896_v10 = vpop.permute.xlu1 %1895 }
 0x950   :  { %v1898_v13 = vunpack.i.h.bf16 %v1896_v10  ;;  %v1897_v14 = vunpack.i.l.bf16 %v1896_v10 }
 0x952   :  { %1265 = vmatpush.msra.mxu2 %v1897_v14  ;;  %1300 = vmatpush.msra.mxu3 %v1898_v13 }
 0x953   :  { %1900 = vrot.lane.b32.xlu2 %v1899_v15, %s2037_s1 }
 0x954   :  { %1207 = vadd.xlane.f32.xlu0 %v1206_v16 }
 0x957   :  { %v1906_v18 = vpop.permute.xlu1 %1905 }
 0x958   :  { %v1907_v22 = vunpack.i.l.bf16 %v1906_v18  ;;  %v1908_v26 = vunpack.i.h.bf16 %v1906_v18 }
 0x95a   :  { %1335 = vmatpush.msrb.mxu0 %v1907_v22 }
 0x95c   :  { %1336 = vmatpush.msrb.mxu0 %v1908_v26 }
 0x95e   :  { %1463 = vmatpush.msra.mxu0 %v1835_v55  ;;  %v1861_v55 = vld [vmem:[%s2776_s9 + $0x70] sm:$0xff] }
 0x95f   :  { %v1911_v27 = vpop.permute.xlu1 %1910 }
 0x960   :  { %v1912_v28 = vunpack.i.l.bf16 %v1911_v27  ;;  %v1913_v29 = vunpack.i.h.bf16 %v1911_v27 }
 0x962   :  { %1370 = vmatpush.msrb.mxu1 %v1912_v28 }
 0x964   :  { %1371 = vmatpush.msrb.mxu1 %v1913_v29 }
 0x966   :  { %1492 = vmatpush.msra.mxu1 %v1836_v60 }
 0x97c   :  { %1213 = vadd.xlane.f32.xlu2 %v1212_v31 }
 0x9a1   :  { %v1199_v32 = vpop.xlane.xlu0 %1198 }
 0x9a2   :  { %1986 = vrcp.f32 %v1199_v32 }
 0x9a5   :  { %v1193_v33 = vpop.xlane.xlu2 %1192 }
 0x9a6   :  { %1988 = vrcp.f32 %v1193_v33 }
 0x9a8   :  { %v1987_v36 = vpop.eup %1986 }
 0x9a9   :  { %v1225_v37 = vmul.f32 %v1987_v36, %v2583_v47 }
 0x9ab   :  { %1233 = vst.msk [vmem:[%s2781_s14 + $0x10] sm:$0xff] %vm315_vm2, %v1225_v37 }
 0x9ac   :  { %v1989_v38 = vpop.eup %1988 }
 0x9ad   :  { %v1223_v35 = vmul.f32 %v1989_v38, %v2587_v52  ;;  %v1196_v39 = vpop.xlane.xlu2 %1195 }
 0x9ae   :  { %1990 = vrcp.f32 %v1196_v39 }
 0x9af   :  { %1231 = vst.msk [vmem:[%s2781_s14] sm:$0xff] %vm315_vm2, %v1223_v35  ;;  %v1205_v20 = vpop.xlane.xlu0 %1204 }
 0x9b0   :  { %1992 = vrcp.f32 %v1205_v20 }
 0x9b4   :  { %v1991_v25 = vpop.eup %1990 }
 0x9b5   :  { %v1901_v34 = vpop.permute.xlu2 %1900  ;;  %v1224_v44 = vmul.f32 %v1991_v25, %v2591_v61  ;;  %v1850_v25 = vld [vmem:[%s2774_s7 + $0x30] sm:$0xff] }
 0x9b6   :  { %v1993_v40 = vpop.eup %1992  ;;  %v1903_v41 = vunpack.i.h.bf16 %v1901_v34  ;;  %v1902_v42 = vunpack.i.l.bf16 %v1901_v34  ;;  %v1849_v34 = vld [vmem:[%s2774_s7 + $0x28] sm:$0xff] }
 0x9b7   :  { %v1227_v19 = vmul.f32 %v1993_v40, %v2595_v17  ;;  %v1202_v21 = vpop.xlane.xlu0 %1201  ;;  %1232 = vst.msk [vmem:[%s2781_s14 + $0x8] sm:$0xff] %vm315_vm2, %v1224_v44 }
 0x9b8   :  { %1994 = vrcp.f32 %v1202_v21  ;;  %1266 = vmatpush.msra.mxu2 %v1902_v42  ;;  %1301 = vmatpush.msra.mxu3 %v1903_v41 }
 0x9b9   :  { %1235 = vst.msk [vmem:[%s2781_s14 + $0x20] sm:$0xff] %vm315_vm2, %v1227_v19  ;;  %1825 = vmatmul.msk.f32.vlgmr.msra.gmra.mxu2 %vm315_vm2, %v1223_v35  ;;  %1827 = vmatmul.msk.f32.vlgmr.msra.gmra.mxu3 %vm315_vm2, %v1225_v37 }
 0x9ba   :  { %1829 = vmatmul.msk.f32.vlgmr.msrb.gmra.mxu0 %vm315_vm2, %v1227_v19  ;;  %1405 = vmatpush.msrb.mxu2 %v1833_v11  ;;  %v1860_v11 = vld [vmem:[%s2776_s9 + $0x68] sm:$0xff] }
 0x9bb   :  { %1434 = vmatpush.msrb.mxu3 %v1834_v59 }
 0x9be   :  { %v1995_v43 = vpop.eup %1994 }
 0x9bf   :  { %v1211_v47 = vpop.xlane.xlu0 %1210  ;;  %v1226_v48 = vmul.f32 %v1995_v43, %v2599_v3 }
 0x9c0   :  { %1996 = vrcp.f32 %v1211_v47 }
 0x9c1   :  { %1826 = vmatmul.msk.f32.gmra.mxu2 %vm315_vm2, %v1224_v44  ;;  %1234 = vst.msk [vmem:[%s2781_s14 + $0x18] sm:$0xff] %vm315_vm2, %v1226_v48  ;;  %1828 = vmatmul.msk.f32.gmra.mxu3 %vm315_vm2, %v1226_v48  ;;  %v1848_v44 = vld [vmem:[%s2774_s7 + $0x20] sm:$0xff] }
 0x9c6   :  { %v1997_v49 = vpop.eup %1996 }
 0x9c7   :  { %v1229_v46 = vmul.f32 %v1997_v49, %v2603_v8  ;;  %v1208_v50 = vpop.xlane.xlu0 %1207 }
 0x9c8   :  { %1998 = vrcp.f32 %v1208_v50 }
 0x9c9   :  { %1237 = vst.msk [vmem:[%s2781_s14 + $0x30] sm:$0xff] %vm315_vm2, %v1229_v46  ;;  %1831 = vmatmul.msk.f32.vlgmr.msrb.gmra.mxu1 %vm315_vm2, %v1229_v46  ;;  %v1922_v46 = vld [vmem:[%s2772_s5 + $0x1] ss:$0 sm:$0xff] }
 0x9ce   :  { %v1999_v51 = vpop.eup %1998 }
 0x9cf   :  { %v1228_v52 = vmul.f32 %v1999_v51, %v2607_v12 }
 0x9d1   :  { %1236 = vst.msk [vmem:[%s2781_s14 + $0x28] sm:$0xff] %vm315_vm2, %v1228_v52  ;;  %1830 = vmatmul.msk.f32.gmra.mxu0 %vm315_vm2, %v1228_v52  ;;  %v1923_v52 = vld [vmem:[%s2773_s6 + $0x1] ss:$0 sm:$0xff] }
 0x9ef   :  { %v1214_v23 = vpop.xlane.xlu2 %1213 }
 0x9f0   :  { %2000 = vrcp.f32 %v1214_v23 }
 0x9f6   :  { %v2001_v24 = vpop.eup %2000 }
 0x9f7   :  { %v1230_v53 = vmul.f32 %v2001_v24, %v1985_v30 }
 0x9f9   :  { %1238 = vst.msk [vmem:[%s2781_s14 + $0x38] sm:$0xff] %vm315_vm2, %v1230_v53  ;;  %1832 = vmatmul.msk.f32.gmra.mxu1 %vm315_vm2, %v1230_v53  ;;  %v1862_v53 = vld [vmem:[%s2776_s9 + $0x78] sm:$0xff] }
 0x9fa   :  { %1642 = vmatpush.msra.mxu3 %v1862_v53 }
 0x9fc   :  { %1643 = vmatpush.msra.mxu3 %v1861_v55 }
 0x9fe   :  { %1644 = vmatpush.msra.mxu3 %v1860_v11 }
 0xa37   :  { %v1338_v61 = vpop.f32.mrf.mxu0 }
 0xa38   :  { %1841 = vmatmul.msk.f32.vlgmr.msra.gmra.mxu0 %vm172_vm1, %v1338_v61  ;;  %v1859_v61 = vld [vmem:[%s2776_s9 + $0x60] sm:$0xff] }
 0xa39   :  { %1645 = vmatpush.msra.mxu3 %v1859_v61 }
 0xa3c   :  { %v1268_v62 = vpop.f32.mrf.mxu2  ;;  %v1303_v17 = vpop.f32.mrf.mxu3 }
 0xa3d   :  { %1837 = vmatmul.msk.f32.vlgmr.msrb.gmra.mxu2 %vm172_vm1, %v1268_v62  ;;  %1839 = vmatmul.msk.f32.vlgmr.msrb.gmra.mxu3 %vm172_vm1, %v1303_v17  ;;  %v1858_v17 = vld [vmem:[%s2776_s9 + $0x58] sm:$0xff] }
 0xa3e   :  { %1646 = vmatpush.msra.mxu3 %v1858_v17 }
 0xa44   :  { %v1271_v63 = vpop.f32.mrf.mxu2  ;;  %v1306_v0 = vpop.f32.mrf.mxu3 }
 0xa45   :  { %1838 = vmatmul.msk.f32.gmra.mxu2 %vm172_vm1, %v1271_v63  ;;  %1840 = vmatmul.msk.f32.gmra.mxu3 %vm172_vm1, %v1306_v0 }
 0xa46   :  { %v1373_v1 = vpop.f32.mrf.mxu1 }
 0xa47   :  { %1843 = vmatmul.msk.f32.vlgmr.msra.gmra.mxu1 %vm172_vm1, %v1373_v1 }
 0xa4e   :  { %v1341_v2 = vpop.f32.mrf.mxu0 }
 0xa4f   :  { %1842 = vmatmul.msk.f32.gmra.mxu0 %vm172_vm1, %v1341_v2 }
 0xa76   :  { %v1376_v3 = vpop.f32.mrf.mxu1 }
 0xa77   :  { %1844 = vmatmul.msk.f32.gmra.mxu1 %vm172_vm1, %v1376_v3 }
 0xab5   :  { %v1465_v7 = vpop.f32.mrf.mxu0 }
 0xac0   :  { %v1407_v4 = vpop.f32.mrf.mxu2  ;;  %v1436_v5 = vpop.f32.mrf.mxu3 }
 0xac1   :  { %v1500_v6 = vadd.f32 %v1436_v5, %v1407_v4 }
 0xac3   :  { %v1502_v8 = vadd.f32 %v1500_v6, %v1465_v7 }
 0xac4   :  { %v1494_v10 = vpop.f32.mrf.mxu1 }
 0xac5   :  { %v1504_v12 = vadd.f32 %v1502_v8, %v1494_v10  ;;  %v1856_v10 = vld [vmem:[%s2776_s9 + $0x48] sm:$0xff] }
 0xac7   :  { %v1511_v13 = vadd.f32 %v1921_v9, %v1504_v12  ;;  %v1855_v12 = vld [vmem:[%s2776_s9 + $0x40] sm:$0xff] }
 0xac8   :  { %v1410_v16 = vpop.f32.mrf.mxu2  ;;  %v1439_v18 = vpop.f32.mrf.mxu3 }
 0xac9   :  { %v1513_v14 = vadd.f32 %v1511_v13, %v2477_v45  ;;  %v1501_v26 = vadd.f32 %v1439_v18, %v1410_v16  ;;  %v1924_v13 = vld [vmem:[%s2775_s8 + $0x1] ss:$0 sm:$0xff] }
 0xacb   :  { %v1515_v15 = vsel %vm67_vm0, %v1513_v14, 0.0 }
 0xacc   :  { %1516 = vadd.xlane.f32.xlu0 %v1515_v15  ;;  %v1468_v22 = vpop.f32.mrf.mxu0 }
 0xacd   :  { %v1503_v27 = vadd.f32 %v1501_v26, %v1468_v22 }
 0xaf4   :  { %v1497_v28 = vpop.f32.mrf.mxu1 }
 0xaf5   :  { %v1505_v29 = vadd.f32 %v1503_v27, %v1497_v28  ;;  %v1925_v27 = vld [vmem:[%s2777_s10 + $0x1] ss:$0 sm:$0xff] }
 0xaf7   :  { %v1512_v56 = vadd.f32 %v1921_v9, %v1505_v29  ;;  %v1857_v9 = vld [vmem:[%s2776_s9 + $0x50] sm:$0xff] }
 0xaf8   :  { %1647 = vmatpush.msra.mxu3 %v1857_v9 }
 0xaf9   :  { %v1514_v57 = vadd.f32 %v1512_v56, %v2489_v54  ;;  %v1851_v54 = vld [vmem:[%s2774_s7 + $0x38] sm:$0xff]  ;;  %s1725_s7 = sshll.u32 %s2780_s13, 4  ;;  %s1726_s7 = int_to_ptr.hbm [resolvable:$true] %s1725_s7 }
 0xafa   :  { %1601 = vmatpush.msra.mxu2 %v1851_v54  ;;  %1648 = vmatpush.msra.mxu3 %v1856_v10 }
 0xafb   :  { %v1518_v30 = vsel %vm67_vm0, %v1514_v57, 0.0 }
 0xafc   :  { %1519 = vadd.xlane.f32.xlu1 %v1518_v30  ;;  %1602 = vmatpush.msra.mxu2 %v1850_v25 }
 0xafd   :  { %1649 = vmatpush.msra.mxu3 %v1855_v12 }
 0xafe   :  { %1603 = vmatpush.msra.mxu2 %v1849_v34 }
 0xb00   :  { %1604 = vmatpush.msra.mxu2 %v1848_v44 }
 0xb3f   :  { %v1517_v31 = vpop.xlane.xlu0 %1516 }
 0xb40   :  { %v1521_v32 = vmul.f32 %v1517_v31, %v2352_v58 }
 0xb42   :  { %v1523_v45 = vsub.f32 %v1513_v14, %v1521_v32 }
 0xb44   :  { %v1525_v33 = vmul.f32 %v1523_v45, %v1523_v45 }
 0xb46   :  { %v1527_v36 = vsel %vm67_vm0, %v1525_v33, 0.0 }
 0xb47   :  { %1528 = vadd.xlane.f32.xlu0 %v1527_v36 }
 0xb6f   :  { %v1520_v37 = vpop.xlane.xlu1 %1519 }
 0xb70   :  { %v1522_v38 = vmul.f32 %v1520_v37, %v2352_v58 }
 0xb72   :  { %v1524_v35 = vsub.f32 %v1514_v57, %v1522_v38 }
 0xb74   :  { %v1526_v39 = vmul.f32 %v1524_v35, %v1524_v35 }
 0xb76   :  { %v1530_v20 = vsel %vm67_vm0, %v1526_v39, 0.0 }
 0xb77   :  { %1531 = vadd.xlane.f32.xlu0 %v1530_v20 }
 0xbba   :  { %v1529_v40 = vpop.xlane.xlu0 %1528 }
 0xbbb   :  { %v1533_v41 = vmul.f32 %v1529_v40, %v2352_v58 }
 0xbbd   :  { %v1535_v42 = vadd.f32 1e-05, %v1533_v41 }
 0xbbf   :  { %2002 = vrsqrt.f32 %v1535_v42  ;;  %vm1543_vm2 = vweird.f32 %v1535_v42 }
 0xbc5   :  { %v2003_v19 = vpop.eup %2002 }
 0xbc6   :  { %v1538_v21 = vmul.f32 %v2003_v19, %v1535_v42  ;;  %vm1544_vm1 = vweird.f32 %v2003_v19 }
 0xbc7   :  { %vm1545_vm4 = vmor %vm1543_vm2, %vm1544_vm1 }
 0xbc8   :  { %v1539_v43 = vmul.f32 %v2003_v19, %v1538_v21 }
 0xbca   :  { %v1540_v47 = vmul.f32 0.5, %v1539_v43 }
 0xbcc   :  { %v1541_v48 = vsub.f32 1.5, %v1540_v47 }
 0xbce   :  { %v1542_v49 = vmul.f32 %v2003_v19, %v1541_v48 }
 0xbd0   :  { %v1546_v50 = vsel %vm1545_vm4, %v2003_v19, %v1542_v49  ;;  %v1926_v49 = vld [vmem:[%s2778_s11 + $0x1] ss:$0 sm:$0xff]  ;;  %s2039_s11 = smov [#allocation2]  }
 0xbd1   :  { %v1557_v51 = vmul.f32 %v1546_v50, %v1523_v45 }
 0xbd3   :  { %v1564_v23 = vmul.f32 %v1922_v46, %v1557_v51  ;;  %v1927_v51 = vld [vmem:[%s2779_s12 + $0x1] ss:$0 sm:$0xff]  ;;  %s1723_s12 = sshll.u32 %s2039_s11, 4  ;;  %s1724_s12 = int_to_ptr.vmem [resolvable:$true] %s1723_s12 }
 0xbd5   :  { %v1571_v24 = vadd.f32 %v1923_v52, %v1564_v23 }
 0xbd7   :  { %1853 = vmatmul.msk.f32.vlgmr.msra.gmra.mxu2 %vm67_vm0, %v1571_v24 }
 0xbea   :  { %v1532_v59 = vpop.xlane.xlu0 %1531 }
 0xbeb   :  { %v1534_v60 = vmul.f32 %v1532_v59, %v2352_v58 }
 0xbed   :  { %v1536_v62 = vadd.f32 1e-05, %v1534_v60 }
 0xbef   :  { %2004 = vrsqrt.f32 %v1536_v62  ;;  %vm1553_vm6 = vweird.f32 %v1536_v62 }
 0xbf5   :  { %v2005_v63 = vpop.eup %2004 }
 0xbf6   :  { %v1548_v0 = vmul.f32 %v2005_v63, %v1536_v62  ;;  %vm1554_vm5 = vweird.f32 %v2005_v63 }
 0xbf7   :  { %vm1555_vm7 = vmor %vm1553_vm6, %vm1554_vm5 }
 0xbf8   :  { %v1549_v1 = vmul.f32 %v2005_v63, %v1548_v0 }
 0xbfa   :  { %v1550_v2 = vmul.f32 0.5, %v1549_v1 }
 0xbfc   :  { %v1551_v3 = vsub.f32 1.5, %v1550_v2 }
 0xbfe   :  { %v1552_v4 = vmul.f32 %v2005_v63, %v1551_v3 }
 0xc00   :  { %v1556_v5 = vsel %vm1555_vm7, %v2005_v63, %v1552_v4 }
 0xc01   :  { %v1558_v6 = vmul.f32 %v1556_v5, %v1524_v35 }
 0xc03   :  { %v1565_v7 = vmul.f32 %v1922_v46, %v1558_v6 }
 0xc05   :  { %v1572_v8 = vadd.f32 %v1923_v52, %v1565_v7 }
 0xc07   :  { %1854 = vmatmul.msk.f32.gmra.mxu2 %vm67_vm0, %v1572_v8 }
 0xc5a   :  { %v1606_v14 = vpop.f32.mrf.mxu2 }
 0xc5b   :  { %v1607_v15 = vadd.f32 %v1924_v13, %v1606_v14 }
 0xc5d   :  { %v1612_v16 = vmax.f32 %v1607_v15, 0.0 }
 0xc5f   :  { %1864 = vmatmul.msk.f32.vlgmr.msra.gmra.mxu3 %vm792_vm10, %v1612_v16 }
 0xc8a   :  { %v1609_v18 = vpop.f32.mrf.mxu2 }
 0xc8b   :  { %v1610_v22 = vadd.f32 %v1924_v13, %v1609_v18 }
 0xc8d   :  { %v1613_v26 = vmax.f32 %v1610_v22, 0.0 }
 0xc8f   :  { %1865 = vmatmul.msk.f32.gmra.mxu3 %vm792_vm10, %v1613_v26 }
 0xce2   :  { %v1651_v28 = vpop.f32.mrf.mxu3 }
 0xce3   :  { %v1652_v29 = vadd.f32 %v1925_v27, %v1651_v28 }
 0xce5   :  { %v1657_v56 = vadd.f32 %v1652_v29, %v1571_v24 }
 0xce7   :  { %v1659_v57 = vsel %vm67_vm0, %v1657_v56, 0.0 }
 0xce8   :  { %1660 = vadd.xlane.f32.xlu0 %v1659_v57 }
 0xd12   :  { %v1654_v30 = vpop.f32.mrf.mxu3 }
 0xd13   :  { %v1655_v31 = vadd.f32 %v1925_v27, %v1654_v30 }
 0xd15   :  { %v1658_v32 = vadd.f32 %v1655_v31, %v1572_v8 }
 0xd17   :  { %v1662_v45 = vsel %vm67_vm0, %v1658_v32, 0.0 }
 0xd18   :  { %1663 = vadd.xlane.f32.xlu0 %v1662_v45 }
 0xd5b   :  { %v1661_v33 = vpop.xlane.xlu0 %1660 }
 0xd5c   :  { %v1665_v36 = vmul.f32 %v1661_v33, %v2352_v58 }
 0xd5e   :  { %v1667_v37 = vsub.f32 %v1657_v56, %v1665_v36 }
 0xd60   :  { %v1669_v38 = vmul.f32 %v1667_v37, %v1667_v37 }
 0xd62   :  { %v1671_v35 = vsel %vm67_vm0, %v1669_v38, 0.0 }
 0xd63   :  { %1672 = vadd.xlane.f32.xlu2 %v1671_v35 }
 0xd8b   :  { %v1664_v39 = vpop.xlane.xlu0 %1663 }
 0xd8c   :  { %v1666_v20 = vmul.f32 %v1664_v39, %v2352_v58 }
 0xd8e   :  { %v1668_v54 = vsub.f32 %v1658_v32, %v1666_v20 }
 0xd90   :  { %v1670_v25 = vmul.f32 %v1668_v54, %v1668_v54 }
 0xd92   :  { %v1674_v34 = vsel %vm67_vm0, %v1670_v25, 0.0 }
 0xd93   :  { %1675 = vadd.xlane.f32.xlu0 %v1674_v34 }
 0xdd6   :  { %v1673_v44 = vpop.xlane.xlu2 %1672 }
 0xdd7   :  { %v1677_v40 = vmul.f32 %v1673_v44, %v2352_v58 }
 0xdd9   :  { %v1679_v41 = vadd.f32 1e-05, %v1677_v40 }
 0xddb   :  { %2006 = vrsqrt.f32 %v1679_v41  ;;  %vm1687_vm9 = vweird.f32 %v1679_v41 }
 0xde1   :  { %v2007_v42 = vpop.eup %2006 }
 0xde2   :  { %v1682_v19 = vmul.f32 %v2007_v42, %v1679_v41  ;;  %vm1688_vm8 = vweird.f32 %v2007_v42 }
 0xde3   :  { %vm1689_vm10 = vmor %vm1687_vm9, %vm1688_vm8 }
 0xde4   :  { %v1683_v21 = vmul.f32 %v2007_v42, %v1682_v19 }
 0xde6   :  { %v1684_v43 = vmul.f32 0.5, %v1683_v21 }
 0xde8   :  { %v1685_v47 = vsub.f32 1.5, %v1684_v43 }
 0xdea   :  { %v1686_v48 = vmul.f32 %v2007_v42, %v1685_v47 }
 0xdec   :  { %v1690_v46 = vsel %vm1689_vm10, %v2007_v42, %v1686_v48 }
 0xded   :  { %v1701_v50 = vmul.f32 %v1690_v46, %v1667_v37 }
 0xdef   :  { %v1708_v52 = vmul.f32 %v1926_v49, %v1701_v50 }
 0xdf1   :  { %v1715_v23 = vadd.f32 %v1927_v51, %v1708_v52 }
 0xdf3   :  { %1717 = vst.msk [vmem:[#allocation2] sm:$0xff] %vm67_vm0, %v1715_v23 }
 0xe06   :  { %v1676_v24 = vpop.xlane.xlu0 %1675 }
 0xe07   :  { %v1678_v53 = vmul.f32 %v1676_v24, %v2352_v58 }
 0xe09   :  { %v1680_v55 = vadd.f32 1e-05, %v1678_v53 }
 0xe0b   :  { %2008 = vrsqrt.f32 %v1680_v55  ;;  %vm1697_vm12 = vweird.f32 %v1680_v55 }
 0xe11   :  { %v2009_v11 = vpop.eup %2008 }
 0xe12   :  { %v1692_v59 = vmul.f32 %v2009_v11, %v1680_v55  ;;  %vm1698_vm11 = vweird.f32 %v2009_v11 }
 0xe13   :  { %vm1699_vm13 = vmor %vm1697_vm12, %vm1698_vm11 }
 0xe14   :  { %v1693_v60 = vmul.f32 %v2009_v11, %v1692_v59 }
 0xe16   :  { %v1694_v61 = vmul.f32 0.5, %v1693_v60 }
 0xe18   :  { %v1695_v62 = vsub.f32 1.5, %v1694_v61 }
 0xe1a   :  { %v1696_v17 = vmul.f32 %v2009_v11, %v1695_v62 }
 0xe1c   :  { %v1700_v63 = vsel %vm1699_vm13, %v2009_v11, %v1696_v17 }
 0xe1d   :  { %v1702_v0 = vmul.f32 %v1700_v63, %v1668_v54 }
 0xe1f   :  { %v1709_v58 = vmul.f32 %v1926_v49, %v1702_v0 }
 0xe21   :  { %v1716_v1 = vadd.f32 %v1927_v51, %v1709_v58 }
 0xe23   :  { %1718 = vst.msk [vmem:[#allocation2 + $0x8] sm:$0xff] %vm67_vm0, %v1716_v1 }
 0xe24   :  { %1731 = dma.vmem_to_hbm [thread:$0]  %s1724_s12, 256, %s1726_s7, [#allocation3], %s2040_s30, %s2040_s30, %s2041_s2  }
 0xe25   :  { %2034 = dma.done.wait [#allocation3], 256  }
 0xe26   :  { %2035 = vsyncadd [#allocation3], 4294967040 }
 0xe27   :  { %1740 = vsyncpa [#allocation3], 1 }

</bundles_post_ra>
